<compile_context>
chip_gen: v7x
topology: tpu7x:2x2x1
jax: 0.10.0
libtpu: 0.0.40
codegen_flags: <defaults>
</compile_context>

<pallas_src>
import functools

import jax
import jax.numpy as jnp
from jax.experimental import pallas as pl
from jax.experimental.pallas import tpu as pltpu

OUTPUT_CHANNELS_RTS_VALID = 11
MAX_TRANSLATION_FRACTION = 0.1
SCAL_LANES = 128            # lane-dense [sigma, is_valid, 0...] output slab


# ------------------------------ fused kernel -------------------------------

def _fused_kernel(x_ref, w1_ref, b1_ref, w2_ref, b2_ref, ms_ref, pts_ref,
                  wblk_ref, g_ref, img_ref, scal_ref, q_sc, *,
                  batch, n_points, max_translation):
    B, Nv = batch, n_points

    # ---- per-batch work: run once on the first HW tile; cached in VMEM scratch.
    @pl.when(pl.program_id(0) == 0)
    def _prologue():
        # Prediction network: flatten + 2-layer MLP, batched to M=B
        # (two MXU matmuls instead of B separate M=1 matmuls).
        h = jnp.dot(x_ref[...], w1_ref[...], preferred_element_type=jnp.float32)
        h = jnp.maximum(h + b1_ref[...], 0.0)
        lg = (jnp.dot(h, w2_ref[...], preferred_element_type=jnp.float32)
              + b2_ref[...])                                     # (B, OUT_PAD)

        # split_output_rts_valid: transcendentals over the whole (B, OUT_PAD)
        # vreg once (single EUP pushes), lane slices afterwards.
        th = jnp.tanh(lg)
        sg = 1.0 / (1.0 + jnp.exp(-lg))
        sp = jnp.log(1.0 + jnp.exp(-jnp.abs(lg))) + jnp.maximum(lg, 0.0)

        tx = th[:, 0:1] * max_translation                        # (B, 1)
        ty = th[:, 1:2] * max_translation
        # t_z = tanh(lg[:,2:3])*max_translation and the third rotation row only
        # move points along z, which the orthographic splat drops.
        sigma = (sp[:, 3:4] + 1.0) * ms_ref[...]                 # (B, 1)
        is_valid = sg[:, 10:11]                                  # (B, 1)

        # so3_6D (Zhou et al. Gram-Schmidt), rows b1/b2 of R, vectorised over B.
        a1x, a1y, a1z = lg[:, 4:5], lg[:, 5:6], lg[:, 6:7]
        a2x, a2y, a2z = lg[:, 7:8], lg[:, 8:9], lg[:, 9:10]
        inv_n1 = jax.lax.rsqrt(a1x * a1x + a1y * a1y + a1z * a1z + 1e-12)
        r1x, r1y, r1z = a1x * inv_n1, a1y * inv_n1, a1z * inv_n1
        d = r1x * a2x + r1y * a2y + r1z * a2z
        c2x, c2y, c2z = a2x - d * r1x, a2y - d * r1y, a2z - d * r1z
        inv_n2 = jax.lax.rsqrt(c2x * c2x + c2y * c2y + c2z * c2z + 1e-12)
        r2x, r2y, r2z = c2x * inv_n2, c2y * inv_n2, c2z * inv_n2

        # -1/(2 sigma^2) folded into the Nv-side factors so the (4, HW)
        # pixel-grid factors stay grid-invariant residents.
        inv2s2 = 0.5 / (sigma * sigma)                           # (B, 1)
        two_c = 2.0 * inv2s2
        neg_c = -inv2s2

        pts = pts_ref[...]                                       # (Nv, 3)
        px, py, pz = pts[:, 0:1], pts[:, 1:2], pts[:, 2:3]
        # TODO(synk): for large Nv switch points to a (3, Nv) lane-dense layout;
        # at Nv=64 this (Nv,1)-column math is negligible and lowers robustly.
        q_blocks = []
        for b in range(B):                                       # static unroll
            qx = (px * r1x[b:b + 1, :] + py * r1y[b:b + 1, :]
                  + pz * r1z[b:b + 1, :] + tx[b:b + 1, :])       # (Nv, 1)
            qy = (px * r2x[b:b + 1, :] + py * r2y[b:b + 1, :]
                  + pz * r2z[b:b + 1, :] + ty[b:b + 1, :])
            tc, nc = two_c[b:b + 1, :], neg_c[b:b + 1, :]
            q_blocks.append(jnp.concatenate(
                [qx * tc, qy * tc, jnp.broadcast_to(nc, (Nv, 1)),
                 (qx * qx + qy * qy) * nc], axis=1))             # (Nv, 4)
        q_sc[...] = jnp.concatenate(q_blocks, axis=0)            # (B*Nv, 4)

        # lane-dense (B, 128) scalar slab: lane 0 = sigma, lane 1 = is_valid.
        scal_ref[...] = jnp.concatenate(
            [sigma, is_valid,
             jnp.zeros((B, SCAL_LANES - 2), jnp.float32)], axis=1)

    # ---- per HW-tile render: f32 MXU distance matmul (expanded form needs f32
    # accumulation), f32 exp (parity with the torch module), bf16 MXU weighted
    # sum with f32 accumulation.
    # arg[b*Nv+n, p] = -((qx-gx)^2 + (qy-gy)^2) / (2 sigma_b^2)
    arg = jnp.dot(q_sc[...], g_ref[...],
                  preferred_element_type=jnp.float32)            # (B*Nv, HWt)
    kern = jnp.exp(arg).astype(jnp.bfloat16)                     # cast AFTER exp
    img_ref[...] = jnp.dot(wblk_ref[...], kern,
                           preferred_element_type=jnp.float32)   # (B, HWt)


# ------------------------------ pallas wrapper ------------------------------

def _tpu_generation():
    try:
        kind = jax.devices()[0].device_kind.lower()
    except Exception:
        return 0
    for g in (7, 6, 5, 4, 3, 2):
        if "v%d" % g in kind:
            return g
    return 0


def _pick_hw_tile(hw, cap):
    """Largest 128-lane-multiple tile <= cap that divides hw (or hw itself)."""
    if hw <= cap or hw % 128 != 0:
        return hw
    best, t = 128, 128
    while t <= cap:
        if hw % t == 0:
            best = t
        t += 128
    return best


def fused_forward_call(x_flat, w1, b1, w2, b2, min_sigma, points, wblk, g_const,
                       *, max_translation):
    """One pallas_call: batched MLP -> pose decode -> tiled splat render."""
    B, DIN = x_flat.shape
    HID = w1.shape[1]
    OUT_PAD = w2.shape[1]
    Nv = points.shape[0]
    HW = g_const.shape[1]

    gen = _tpu_generation()
    # v7x: 64 MiB physical VMEM -> smaller tiles + tighter scoped limit;
    # v5e/v6e: 128 MiB -> larger tiles amortise the ~0.35 us per-step overhead.
    hw_tile = _pick_hw_tile(HW, 2048 if gen >= 7 else 4096)
    vmem_limit = (40 if gen >= 7 else 64) * 1024 * 1024
    n_tiles = HW // hw_tile

    kernel = functools.partial(_fused_kernel, batch=B, n_points=Nv,
                               max_translation=max_translation)

    img, scal = pl.pallas_call(
        kernel,
        out_shape=(jax.ShapeDtypeStruct((B, HW), jnp.float32),
                   jax.ShapeDtypeStruct((B, SCAL_LANES), jnp.float32)),
        grid=(n_tiles,),
        in_specs=[
            pl.BlockSpec((B, DIN), lambda t: (0, 0)),         # images (resident)
            pl.BlockSpec((DIN, HID), lambda t: (0, 0)),       # MLP weights (resident)
            pl.BlockSpec((1, HID), lambda t: (0, 0)),
            pl.BlockSpec((HID, OUT_PAD), lambda t: (0, 0)),
            pl.BlockSpec((1, OUT_PAD), lambda t: (0, 0)),
            pl.BlockSpec((1, 1), lambda t: (0, 0)),           # min_sigma
            pl.BlockSpec((Nv, 3), lambda t: (0, 0)),          # model points (resident)
            pl.BlockSpec((B, B * Nv), lambda t: (0, 0)),      # block-diag intensities
            pl.BlockSpec((4, hw_tile), lambda t: (0, t)),     # pixel-grid factors
        ],
        out_specs=(
            pl.BlockSpec((B, hw_tile), lambda t: (0, t)),     # lane-dense image
            pl.BlockSpec((B, SCAL_LANES), lambda t: (0, 0)),  # [sigma, is_valid, ..]
        ),
        scratch_shapes=[pltpu.VMEM((B * Nv, 4), jnp.float32)],  # cached q_aug
        compiler_params=pltpu.CompilerParams(
            # q_aug scratch + constant-index scal output are carried across the
            # HW-tile axis -> keep it "arbitrary" (serial grid).  For huge HW on
            # v7x, split the tile axis across cores and recompute the prologue.
            dimension_semantics=("arbitrary",),
            vmem_limit_bytes=vmem_limit),
    )(x_flat, w1, b1, w2, b2, min_sigma, points, wblk, g_const)
    return img, scal


# ------------------------------ plain-JAX glue ------------------------------

def _inverse_sigmoid(x):
    return -jnp.log(1.0 / (x + 1e-16) - 1.0)


def init_params(key, din, hid, model_size, cube):
    n_param = 0  # identity parameterisation -> 0 extra parameters
    out_ch = OUTPUT_CHANNELS_RTS_VALID + n_param
    out_pad = ((out_ch + 127) // 128) * 128     # pad to a full 128-lane tile
    k1, k2, k3 = jax.random.split(key, 3)
    model_scale = cube * 10.0
    new_points = 0.25 * cube * (
        jax.random.uniform(k3, (model_size, 3), jnp.float32) - 0.5)
    new_intens = jnp.ones((model_size,), jnp.float32) * 0.5
    w2 = jax.random.normal(k2, (hid, out_ch), jnp.float32) / jnp.sqrt(hid)
    # Padded columns are zero and never read (lanes 0..10 only); padding keeps
    # the logits matmul / stores unmasked and lane-dense.
    w2 = jnp.pad(w2, ((0, 0), (0, out_pad - out_ch)))
    return {
        "w1": jax.random.normal(k1, (din, hid), jnp.float32) / jnp.sqrt(din),
        "b1": jnp.zeros((1, hid), jnp.float32),
        "w2": w2,
        "b2": jnp.zeros((1, out_pad), jnp.float32),
        "model_points": new_points / model_scale,
        "model_intensities": _inverse_sigmoid(new_intens) / 100.0,
    }


def forward(params, x, min_sigma_nm, cube, H, W):
    """GeneralPredictReconstruction.forward — single fused Pallas launch."""
    B = x.shape[0]
    HW = H * W
    max_translation = cube * MAX_TRANSLATION_FRACTION
    model_scale = cube * 10.0

    # get_model(): O(Nv) parameter transforms, done once in the wrapper.
    points_nm = params["model_points"] * model_scale                   # (Nv, 3)
    intens = jax.nn.sigmoid(100.0 * params["model_intensities"])       # (Nv,)
    Nv = points_nm.shape[0]

    # Block-diagonal intensity matrix: wblk[b, b*Nv + n] = intens[n]; bf16
    # operands into the post-exp MXU matmul (f32 accumulation) on all chips.
    wblk = (jnp.eye(B, dtype=jnp.float32)[:, :, None]
            * intens[None, None, :]).reshape(B, B * Nv).astype(jnp.bfloat16)

    # Grid-invariant pixel-grid factors [gx, gy, gx^2+gy^2, 1]; sigma is folded
    # into the Nv-side factors inside the kernel (orthographic splat renderfunc).
    jj = ((jnp.arange(W, dtype=jnp.float32) + 0.5) / W - 0.5) * cube
    ii = ((jnp.arange(H, dtype=jnp.float32) + 0.5) / H - 0.5) * cube
    gx = jnp.tile(jj, (H,))              # flat p = i*W + j
    gy = jnp.repeat(ii, W)
    g_const = jnp.stack([gx, gy, gx * gx + gy * gy, jnp.ones_like(gx)], axis=0)

    x_flat = x.reshape(B, HW)
    ms = jnp.asarray(min_sigma_nm, jnp.float32).reshape(1, 1)

    img_flat, scal = fused_forward_call(
        x_flat, params["w1"], params["b1"], params["w2"], params["b2"],
        ms, points_nm, wblk, g_const, max_translation=max_translation)

    sigma = scal[:, 0]                       # (B,)
    is_valid = scal[:, 1]                    # (B,)
    aggregate = jnp.zeros((B, 1), jnp.float32)   # identity parameterisation
    # TODO(synk): image kept f32 for parity with the torch module; emit bf16
    # if downstream tolerates it (halves HBM writeback at large H*W).
    images = img_flat.reshape(B, 1, H, W)    # NCHW only for the module contract
    return [images], aggregate, sigma, is_valid


# ---------------------------------- main ------------------------------------

if __name__ == "__main__":
    key = jax.random.PRNGKey(0)
    k_param, k_x = jax.random.split(key)

    B, H, W = 2, 16, 16
    model_size = 64
    hidden = 128
    cube = 100.0                              # volume_cube_size_nm
    min_sigma_nm = jnp.full((1, 1), 5.0, jnp.float32)

    # __init__: the synthetic renderfunc emits (1, 1, H, W) sample images and
    # the synthetic network_factory flattens them -> network input size = H*W.
    din = H * W

    params = init_params(k_param, din, hidden, model_size, cube)
    x = jax.random.normal(k_x, (B, 1, H, W), jnp.float32)   # NCHW input images

    rendered, aggregate, sigma, is_valid = forward(
        params, x, min_sigma_nm, cube, H, W)
    jax.block_until_ready((rendered[0], aggregate, sigma, is_valid))

    assert rendered[0].shape == (B, 1, H, W)
    assert sigma.shape == (B,)
    assert is_valid.shape == (B,)
    assert aggregate.shape[0] == B
    assert bool(jnp.all(jnp.isfinite(rendered[0])))
    assert bool(jnp.all(jnp.isfinite(sigma)))
    assert bool(jnp.all((is_valid >= 0.0) & (is_valid <= 1.0)))

    print("KERNEL_OK")
</pallas_src>

<mosaic_0001>
module attributes {stable_mosaic.version = 11 : i64} {
  func.func @_fused_kernel(%arg0: i32, %arg1: memref<2x256xf32, #tpu.memory_space<vmem>>, %arg2: memref<256x128xf32, #tpu.memory_space<vmem>>, %arg3: memref<1x128xf32, #tpu.memory_space<vmem>>, %arg4: memref<128x128xf32, #tpu.memory_space<vmem>>, %arg5: memref<1x128xf32, #tpu.memory_space<vmem>>, %arg6: memref<1x1xf32, #tpu.memory_space<vmem>>, %arg7: memref<64x3xf32, #tpu.memory_space<vmem>>, %arg8: memref<2x128xbf16, #tpu.memory_space<vmem>>, %arg9: memref<4x256xf32, #tpu.memory_space<vmem>>, %arg10: memref<2x256xf32, #tpu.memory_space<vmem>>, %arg11: memref<2x128xf32, #tpu.memory_space<vmem>>, %arg12: memref<128x4xf32, #tpu.memory_space<vmem>>) attributes {dimension_semantics = [#tpu.dimension_semantics<arbitrary>], iteration_bounds = array<i64: 1>, scalar_prefetch = 0 : i64, scratch_operands = 1 : i64, tpu.core_type = #tpu.core_type<tc>, window_params = [{pipeline_mode = #tpu.pipeline_mode<synchronous>, transform_indices = @transform_0, window_bounds = array<i64: 2, 256>}, {pipeline_mode = #tpu.pipeline_mode<synchronous>, transform_indices = @transform_1, window_bounds = array<i64: 256, 128>}, {pipeline_mode = #tpu.pipeline_mode<synchronous>, transform_indices = @transform_2, window_bounds = array<i64: 1, 128>}, {pipeline_mode = #tpu.pipeline_mode<synchronous>, transform_indices = @transform_3, window_bounds = array<i64: 128, 128>}, {pipeline_mode = #tpu.pipeline_mode<synchronous>, transform_indices = @transform_4, window_bounds = array<i64: 1, 128>}, {pipeline_mode = #tpu.pipeline_mode<synchronous>, transform_indices = @transform_5, window_bounds = array<i64: 1, 1>}, {pipeline_mode = #tpu.pipeline_mode<synchronous>, transform_indices = @transform_6, window_bounds = array<i64: 64, 3>}, {pipeline_mode = #tpu.pipeline_mode<synchronous>, transform_indices = @transform_7, window_bounds = array<i64: 2, 128>}, {transform_indices = @transform_8, window_bounds = array<i64: 4, 256>}, {transform_indices = @transform_9, window_bounds = array<i64: 2, 256>}, {pipeline_mode = #tpu.pipeline_mode<synchronous>, transform_indices = @transform_10, window_bounds = array<i64: 2, 128>}]} {
    %c0_i32 = arith.constant 0 : i32
    %0 = arith.cmpi eq, %arg0, %c0_i32 : i32
    %1 = arith.extui %0 : i1 to i32
    %c0_i32_0 = arith.constant 0 : i32
    %2 = arith.cmpi ne, %1, %c0_i32_0 : i32
    scf.if %2 {
      %c0_9 = arith.constant 0 : index
      %c0_10 = arith.constant 0 : index
      %11 = vector.load %arg1[%c0_9, %c0_10] : memref<2x256xf32, #tpu.memory_space<vmem>>, vector<2x256xf32>
      %c0_11 = arith.constant 0 : index
      %c0_12 = arith.constant 0 : index
      %12 = vector.load %arg2[%c0_11, %c0_12] : memref<256x128xf32, #tpu.memory_space<vmem>>, vector<256x128xf32>
      %cst_13 = arith.constant dense<0.000000e+00> : vector<2x128xf32>
      %13 = tpu.matmul %11, %12, %cst_13 {dimension_numbers = #tpu.dot_dimension_numbers<[1], [0], [0], [1], [0, 0, 1, 1], [], []>} : vector<2x256xf32>, vector<256x128xf32>, vector<2x128xf32> -> vector<2x128xf32>
      %c0_14 = arith.constant 0 : index
      %c0_15 = arith.constant 0 : index
      %14 = vector.load %arg3[%c0_14, %c0_15] : memref<1x128xf32, #tpu.memory_space<vmem>>, vector<1x128xf32>
      %15 = vector.broadcast %14 : vector<1x128xf32> to vector<2x128xf32>
      %16 = arith.addf %13, %15 : vector<2x128xf32>
      %cst_16 = arith.constant 0.000000e+00 : f32
      %17 = vector.broadcast %cst_16 : f32 to vector<2x128xf32>
      %18 = arith.maximumf %16, %17 : vector<2x128xf32>
      %c0_17 = arith.constant 0 : index
      %c0_18 = arith.constant 0 : index
      %19 = vector.load %arg4[%c0_17, %c0_18] : memref<128x128xf32, #tpu.memory_space<vmem>>, vector<128x128xf32>
      %cst_19 = arith.constant dense<0.000000e+00> : vector<2x128xf32>
      %20 = tpu.matmul %18, %19, %cst_19 {dimension_numbers = #tpu.dot_dimension_numbers<[1], [0], [0], [1], [0, 0, 1, 1], [], []>} : vector<2x128xf32>, vector<128x128xf32>, vector<2x128xf32> -> vector<2x128xf32>
      %c0_20 = arith.constant 0 : index
      %c0_21 = arith.constant 0 : index
      %21 = vector.load %arg5[%c0_20, %c0_21] : memref<1x128xf32, #tpu.memory_space<vmem>>, vector<1x128xf32>
      %22 = vector.broadcast %21 : vector<1x128xf32> to vector<2x128xf32>
      %23 = arith.addf %20, %22 : vector<2x128xf32>
      %24 = math.tanh %23 : vector<2x128xf32>
      %cst_22 = arith.constant 0.000000e+00 : f32
      %25 = vector.broadcast %cst_22 : f32 to vector<2x128xf32>
      %26 = arith.subf %25, %23 : vector<2x128xf32>
      %27 = math.exp %26 : vector<2x128xf32>
      %cst_23 = arith.constant 1.000000e+00 : f32
      %28 = vector.broadcast %cst_23 : f32 to vector<2x128xf32>
      %29 = arith.addf %28, %27 : vector<2x128xf32>
      %cst_24 = arith.constant 1.000000e+00 : f32
      %30 = vector.broadcast %cst_24 : f32 to vector<2x128xf32>
      %31 = arith.divf %30, %29 : vector<2x128xf32>
      %32 = math.absf %23 : vector<2x128xf32>
      %cst_25 = arith.constant 0.000000e+00 : f32
      %33 = vector.broadcast %cst_25 : f32 to vector<2x128xf32>
      %34 = arith.subf %33, %32 : vector<2x128xf32>
      %35 = math.exp %34 : vector<2x128xf32>
      %cst_26 = arith.constant 1.000000e+00 : f32
      %36 = vector.broadcast %cst_26 : f32 to vector<2x128xf32>
      %37 = arith.addf %36, %35 : vector<2x128xf32>
      %38 = math.log %37 : vector<2x128xf32>
      %cst_27 = arith.constant 0.000000e+00 : f32
      %39 = vector.broadcast %cst_27 : f32 to vector<2x128xf32>
      %40 = arith.maximumf %23, %39 : vector<2x128xf32>
      %41 = arith.addf %38, %40 : vector<2x128xf32>
      %42 = vector.extract_strided_slice %24 {offsets = [0, 0], sizes = [2, 1], strides = [1, 1]} : vector<2x128xf32> to vector<2x1xf32>
      %cst_28 = arith.constant 1.000000e+01 : f32
      %43 = vector.broadcast %cst_28 : f32 to vector<2x1xf32>
      %44 = arith.mulf %42, %43 : vector<2x1xf32>
      %45 = vector.extract_strided_slice %24 {offsets = [0, 1], sizes = [2, 1], strides = [1, 1]} : vector<2x128xf32> to vector<2x1xf32>
      %cst_29 = arith.constant 1.000000e+01 : f32
      %46 = vector.broadcast %cst_29 : f32 to vector<2x1xf32>
      %47 = arith.mulf %45, %46 : vector<2x1xf32>
      %48 = vector.extract_strided_slice %41 {offsets = [0, 3], sizes = [2, 1], strides = [1, 1]} : vector<2x128xf32> to vector<2x1xf32>
      %cst_30 = arith.constant 1.000000e+00 : f32
      %49 = vector.broadcast %cst_30 : f32 to vector<2x1xf32>
      %50 = arith.addf %48, %49 : vector<2x1xf32>
      %c0_31 = arith.constant 0 : index
      %c0_32 = arith.constant 0 : index
      %51 = vector.load %arg6[%c0_31, %c0_32] : memref<1x1xf32, #tpu.memory_space<vmem>>, vector<1x1xf32>
      %52 = vector.broadcast %51 : vector<1x1xf32> to vector<2x1xf32>
      %53 = arith.mulf %50, %52 : vector<2x1xf32>
      %54 = vector.extract_strided_slice %31 {offsets = [0, 10], sizes = [2, 1], strides = [1, 1]} : vector<2x128xf32> to vector<2x1xf32>
      %55 = vector.extract_strided_slice %23 {offsets = [0, 4], sizes = [2, 1], strides = [1, 1]} : vector<2x128xf32> to vector<2x1xf32>
      %56 = vector.extract_strided_slice %23 {offsets = [0, 5], sizes = [2, 1], strides = [1, 1]} : vector<2x128xf32> to vector<2x1xf32>
      %57 = vector.extract_strided_slice %23 {offsets = [0, 6], sizes = [2, 1], strides = [1, 1]} : vector<2x128xf32> to vector<2x1xf32>
      %58 = vector.extract_strided_slice %23 {offsets = [0, 7], sizes = [2, 1], strides = [1, 1]} : vector<2x128xf32> to vector<2x1xf32>
      %59 = vector.extract_strided_slice %23 {offsets = [0, 8], sizes = [2, 1], strides = [1, 1]} : vector<2x128xf32> to vector<2x1xf32>
      %60 = vector.extract_strided_slice %23 {offsets = [0, 9], sizes = [2, 1], strides = [1, 1]} : vector<2x128xf32> to vector<2x1xf32>
      %61 = arith.mulf %55, %55 : vector<2x1xf32>
      %62 = arith.mulf %56, %56 : vector<2x1xf32>
      %63 = arith.addf %61, %62 : vector<2x1xf32>
      %64 = arith.mulf %57, %57 : vector<2x1xf32>
      %65 = arith.addf %63, %64 : vector<2x1xf32>
      %cst_33 = arith.constant 9.99999996E-13 : f32
      %66 = vector.broadcast %cst_33 : f32 to vector<2x1xf32>
      %67 = arith.addf %65, %66 : vector<2x1xf32>
      %68 = math.rsqrt %67 : vector<2x1xf32>
      %69 = arith.mulf %55, %68 : vector<2x1xf32>
      %70 = arith.mulf %56, %68 : vector<2x1xf32>
      %71 = arith.mulf %57, %68 : vector<2x1xf32>
      %72 = arith.mulf %69, %58 : vector<2x1xf32>
      %73 = arith.mulf %70, %59 : vector<2x1xf32>
      %74 = arith.addf %72, %73 : vector<2x1xf32>
      %75 = arith.mulf %71, %60 : vector<2x1xf32>
      %76 = arith.addf %74, %75 : vector<2x1xf32>
      %77 = arith.mulf %76, %69 : vector<2x1xf32>
      %78 = arith.subf %58, %77 : vector<2x1xf32>
      %79 = arith.mulf %76, %70 : vector<2x1xf32>
      %80 = arith.subf %59, %79 : vector<2x1xf32>
      %81 = arith.mulf %76, %71 : vector<2x1xf32>
      %82 = arith.subf %60, %81 : vector<2x1xf32>
      %83 = arith.mulf %78, %78 : vector<2x1xf32>
      %84 = arith.mulf %80, %80 : vector<2x1xf32>
      %85 = arith.addf %83, %84 : vector<2x1xf32>
      %86 = arith.mulf %82, %82 : vector<2x1xf32>
      %87 = arith.addf %85, %86 : vector<2x1xf32>
      %cst_34 = arith.constant 9.99999996E-13 : f32
      %88 = vector.broadcast %cst_34 : f32 to vector<2x1xf32>
      %89 = arith.addf %87, %88 : vector<2x1xf32>
      %90 = math.rsqrt %89 : vector<2x1xf32>
      %91 = arith.mulf %78, %90 : vector<2x1xf32>
      %92 = arith.mulf %80, %90 : vector<2x1xf32>
      %93 = arith.mulf %82, %90 : vector<2x1xf32>
      %94 = arith.mulf %53, %53 : vector<2x1xf32>
      %cst_35 = arith.constant 5.000000e-01 : f32
      %95 = vector.broadcast %cst_35 : f32 to vector<2x1xf32>
      %96 = arith.divf %95, %94 : vector<2x1xf32>
      %cst_36 = arith.constant 2.000000e+00 : f32
      %97 = vector.broadcast %cst_36 : f32 to vector<2x1xf32>
      %98 = arith.mulf %97, %96 : vector<2x1xf32>
      %cst_37 = arith.constant 0.000000e+00 : f32
      %99 = vector.broadcast %cst_37 : f32 to vector<2x1xf32>
      %100 = arith.subf %99, %96 : vector<2x1xf32>
      %c0_38 = arith.constant 0 : index
      %c0_39 = arith.constant 0 : index
      %101 = vector.load %arg7[%c0_38, %c0_39] : memref<64x3xf32, #tpu.memory_space<vmem>>, vector<64x3xf32>
      %102 = vector.extract_strided_slice %101 {offsets = [0, 0], sizes = [64, 1], strides = [1, 1]} : vector<64x3xf32> to vector<64x1xf32>
      %103 = vector.extract_strided_slice %101 {offsets = [0, 1], sizes = [64, 1], strides = [1, 1]} : vector<64x3xf32> to vector<64x1xf32>
      %104 = vector.extract_strided_slice %101 {offsets = [0, 2], sizes = [64, 1], strides = [1, 1]} : vector<64x3xf32> to vector<64x1xf32>
      %105 = vector.extract_strided_slice %69 {offsets = [0, 0], sizes = [1, 1], strides = [1, 1]} : vector<2x1xf32> to vector<1x1xf32>
      %106 = vector.broadcast %105 : vector<1x1xf32> to vector<64x1xf32>
      %107 = arith.mulf %102, %106 : vector<64x1xf32>
      %108 = vector.extract_strided_slice %70 {offsets = [0, 0], sizes = [1, 1], strides = [1, 1]} : vector<2x1xf32> to vector<1x1xf32>
      %109 = vector.broadcast %108 : vector<1x1xf32> to vector<64x1xf32>
      %110 = arith.mulf %103, %109 : vector<64x1xf32>
      %111 = arith.addf %107, %110 : vector<64x1xf32>
      %112 = vector.extract_strided_slice %71 {offsets = [0, 0], sizes = [1, 1], strides = [1, 1]} : vector<2x1xf32> to vector<1x1xf32>
      %113 = vector.broadcast %112 : vector<1x1xf32> to vector<64x1xf32>
      %114 = arith.mulf %104, %113 : vector<64x1xf32>
      %115 = arith.addf %111, %114 : vector<64x1xf32>
      %116 = vector.extract_strided_slice %44 {offsets = [0, 0], sizes = [1, 1], strides = [1, 1]} : vector<2x1xf32> to vector<1x1xf32>
      %117 = vector.broadcast %116 : vector<1x1xf32> to vector<64x1xf32>
      %118 = arith.addf %115, %117 : vector<64x1xf32>
      %119 = vector.extract_strided_slice %91 {offsets = [0, 0], sizes = [1, 1], strides = [1, 1]} : vector<2x1xf32> to vector<1x1xf32>
      %120 = vector.broadcast %119 : vector<1x1xf32> to vector<64x1xf32>
      %121 = arith.mulf %102, %120 : vector<64x1xf32>
      %122 = vector.extract_strided_slice %92 {offsets = [0, 0], sizes = [1, 1], strides = [1, 1]} : vector<2x1xf32> to vector<1x1xf32>
      %123 = vector.broadcast %122 : vector<1x1xf32> to vector<64x1xf32>
      %124 = arith.mulf %103, %123 : vector<64x1xf32>
      %125 = arith.addf %121, %124 : vector<64x1xf32>
      %126 = vector.extract_strided_slice %93 {offsets = [0, 0], sizes = [1, 1], strides = [1, 1]} : vector<2x1xf32> to vector<1x1xf32>
      %127 = vector.broadcast %126 : vector<1x1xf32> to vector<64x1xf32>
      %128 = arith.mulf %104, %127 : vector<64x1xf32>
      %129 = arith.addf %125, %128 : vector<64x1xf32>
      %130 = vector.extract_strided_slice %47 {offsets = [0, 0], sizes = [1, 1], strides = [1, 1]} : vector<2x1xf32> to vector<1x1xf32>
      %131 = vector.broadcast %130 : vector<1x1xf32> to vector<64x1xf32>
      %132 = arith.addf %129, %131 : vector<64x1xf32>
      %133 = vector.extract_strided_slice %98 {offsets = [0, 0], sizes = [1, 1], strides = [1, 1]} : vector<2x1xf32> to vector<1x1xf32>
      %134 = vector.extract_strided_slice %100 {offsets = [0, 0], sizes = [1, 1], strides = [1, 1]} : vector<2x1xf32> to vector<1x1xf32>
      %135 = vector.broadcast %133 : vector<1x1xf32> to vector<64x1xf32>
      %136 = arith.mulf %118, %135 : vector<64x1xf32>
      %137 = vector.broadcast %133 : vector<1x1xf32> to vector<64x1xf32>
      %138 = arith.mulf %132, %137 : vector<64x1xf32>
      %139 = vector.shape_cast %134 : vector<1x1xf32> to vector<1x1xf32>
      %140 = vector.broadcast %139 : vector<1x1xf32> to vector<64x1xf32>
      %141 = arith.mulf %118, %118 : vector<64x1xf32>
      %142 = arith.mulf %132, %132 : vector<64x1xf32>
      %143 = arith.addf %141, %142 : vector<64x1xf32>
      %144 = vector.broadcast %134 : vector<1x1xf32> to vector<64x1xf32>
      %145 = arith.mulf %143, %144 : vector<64x1xf32>
      %146 = tpu.concatenate %136, %138, %140, %145 in 1 : vector<64x1xf32>, vector<64x1xf32>, vector<64x1xf32>, vector<64x1xf32> -> vector<64x4xf32>
      %147 = vector.extract_strided_slice %69 {offsets = [1, 0], sizes = [1, 1], strides = [1, 1]} : vector<2x1xf32> to vector<1x1xf32>
      %148 = vector.broadcast %147 : vector<1x1xf32> to vector<64x1xf32>
      %149 = arith.mulf %102, %148 : vector<64x1xf32>
      %150 = vector.extract_strided_slice %70 {offsets = [1, 0], sizes = [1, 1], strides = [1, 1]} : vector<2x1xf32> to vector<1x1xf32>
      %151 = vector.broadcast %150 : vector<1x1xf32> to vector<64x1xf32>
      %152 = arith.mulf %103, %151 : vector<64x1xf32>
      %153 = arith.addf %149, %152 : vector<64x1xf32>
      %154 = vector.extract_strided_slice %71 {offsets = [1, 0], sizes = [1, 1], strides = [1, 1]} : vector<2x1xf32> to vector<1x1xf32>
      %155 = vector.broadcast %154 : vector<1x1xf32> to vector<64x1xf32>
      %156 = arith.mulf %104, %155 : vector<64x1xf32>
      %157 = arith.addf %153, %156 : vector<64x1xf32>
      %158 = vector.extract_strided_slice %44 {offsets = [1, 0], sizes = [1, 1], strides = [1, 1]} : vector<2x1xf32> to vector<1x1xf32>
      %159 = vector.broadcast %158 : vector<1x1xf32> to vector<64x1xf32>
      %160 = arith.addf %157, %159 : vector<64x1xf32>
      %161 = vector.extract_strided_slice %91 {offsets = [1, 0], sizes = [1, 1], strides = [1, 1]} : vector<2x1xf32> to vector<1x1xf32>
      %162 = vector.broadcast %161 : vector<1x1xf32> to vector<64x1xf32>
      %163 = arith.mulf %102, %162 : vector<64x1xf32>
      %164 = vector.extract_strided_slice %92 {offsets = [1, 0], sizes = [1, 1], strides = [1, 1]} : vector<2x1xf32> to vector<1x1xf32>
      %165 = vector.broadcast %164 : vector<1x1xf32> to vector<64x1xf32>
      %166 = arith.mulf %103, %165 : vector<64x1xf32>
      %167 = arith.addf %163, %166 : vector<64x1xf32>
      %168 = vector.extract_strided_slice %93 {offsets = [1, 0], sizes = [1, 1], strides = [1, 1]} : vector<2x1xf32> to vector<1x1xf32>
      %169 = vector.broadcast %168 : vector<1x1xf32> to vector<64x1xf32>
      %170 = arith.mulf %104, %169 : vector<64x1xf32>
      %171 = arith.addf %167, %170 : vector<64x1xf32>
      %172 = vector.extract_strided_slice %47 {offsets = [1, 0], sizes = [1, 1], strides = [1, 1]} : vector<2x1xf32> to vector<1x1xf32>
      %173 = vector.broadcast %172 : vector<1x1xf32> to vector<64x1xf32>
      %174 = arith.addf %171, %173 : vector<64x1xf32>
      %175 = vector.extract_strided_slice %98 {offsets = [1, 0], sizes = [1, 1], strides = [1, 1]} : vector<2x1xf32> to vector<1x1xf32>
      %176 = vector.extract_strided_slice %100 {offsets = [1, 0], sizes = [1, 1], strides = [1, 1]} : vector<2x1xf32> to vector<1x1xf32>
      %177 = vector.broadcast %175 : vector<1x1xf32> to vector<64x1xf32>
      %178 = arith.mulf %160, %177 : vector<64x1xf32>
      %179 = vector.broadcast %175 : vector<1x1xf32> to vector<64x1xf32>
      %180 = arith.mulf %174, %179 : vector<64x1xf32>
      %181 = vector.shape_cast %176 : vector<1x1xf32> to vector<1x1xf32>
      %182 = vector.broadcast %181 : vector<1x1xf32> to vector<64x1xf32>
      %183 = arith.mulf %160, %160 : vector<64x1xf32>
      %184 = arith.mulf %174, %174 : vector<64x1xf32>
      %185 = arith.addf %183, %184 : vector<64x1xf32>
      %186 = vector.broadcast %176 : vector<1x1xf32> to vector<64x1xf32>
      %187 = arith.mulf %185, %186 : vector<64x1xf32>
      %188 = tpu.concatenate %178, %180, %182, %187 in 1 : vector<64x1xf32>, vector<64x1xf32>, vector<64x1xf32>, vector<64x1xf32> -> vector<64x4xf32>
      %189 = tpu.concatenate %146, %188 in 0 : vector<64x4xf32>, vector<64x4xf32> -> vector<128x4xf32>
      %c0_40 = arith.constant 0 : index
      %c0_41 = arith.constant 0 : index
      %190 = vector.load %arg12[%c0_40, %c0_41] : memref<128x4xf32, #tpu.memory_space<vmem>>, vector<128x4xf32>
      tpu.vector_store %arg12[%c0_40, %c0_41], %189 {strides = array<i32>} : memref<128x4xf32, #tpu.memory_space<vmem>>, vector<128x4xf32>,
      %cst_42 = arith.constant 0.000000e+00 : f32
      %191 = vector.broadcast %cst_42 : f32 to vector<2x126xf32>
      %192 = tpu.concatenate %53, %54, %191 in 1 : vector<2x1xf32>, vector<2x1xf32>, vector<2x126xf32> -> vector<2x128xf32>
      %c0_43 = arith.constant 0 : index
      %c0_44 = arith.constant 0 : index
      %193 = vector.load %arg11[%c0_43, %c0_44] : memref<2x128xf32, #tpu.memory_space<vmem>>, vector<2x128xf32>
      tpu.vector_store %arg11[%c0_43, %c0_44], %192 {strides = array<i32>} : memref<2x128xf32, #tpu.memory_space<vmem>>, vector<2x128xf32>,
    } else {
    }
    %c0 = arith.constant 0 : index
    %c0_1 = arith.constant 0 : index
    %3 = vector.load %arg12[%c0, %c0_1] : memref<128x4xf32, #tpu.memory_space<vmem>>, vector<128x4xf32>
    %c0_2 = arith.constant 0 : index
    %c0_3 = arith.constant 0 : index
    %4 = vector.load %arg9[%c0_2, %c0_3] : memref<4x256xf32, #tpu.memory_space<vmem>>, vector<4x256xf32>
    %cst = arith.constant dense<0.000000e+00> : vector<128x256xf32>
    %5 = tpu.matmul %3, %4, %cst {dimension_numbers = #tpu.dot_dimension_numbers<[1], [0], [0], [1], [0, 0, 1, 1], [], []>} : vector<128x4xf32>, vector<4x256xf32>, vector<128x256xf32> -> vector<128x256xf32>
    %6 = math.exp %5 : vector<128x256xf32>
    %7 = arith.truncf %6 : vector<128x256xf32> to vector<128x256xbf16>
    %c0_4 = arith.constant 0 : index
    %c0_5 = arith.constant 0 : index
    %8 = vector.load %arg8[%c0_4, %c0_5] : memref<2x128xbf16, #tpu.memory_space<vmem>>, vector<2x128xbf16>
    %cst_6 = arith.constant dense<0.000000e+00> : vector<2x256xf32>
    %9 = tpu.matmul %8, %7, %cst_6 {dimension_numbers = #tpu.dot_dimension_numbers<[1], [0], [0], [1], [0, 0, 1, 1], [], []>} : vector<2x128xbf16>, vector<128x256xbf16>, vector<2x256xf32> -> vector<2x256xf32>
    %c0_7 = arith.constant 0 : index
    %c0_8 = arith.constant 0 : index
    %10 = vector.load %arg10[%c0_7, %c0_8] : memref<2x256xf32, #tpu.memory_space<vmem>>, vector<2x256xf32>
    tpu.vector_store %arg10[%c0_7, %c0_8], %9 {strides = array<i32>} : memref<2x256xf32, #tpu.memory_space<vmem>>, vector<2x256xf32>,
    return
  }
  func.func @transform_0(%arg0: i32) -> (i32, i32) {
    %c0_i32 = arith.constant 0 : i32
    %c0_i32_0 = arith.constant 0 : i32
    %c0_i32_1 = arith.constant 0 : i32
    return %c0_i32, %c0_i32_0 : i32, i32
  }
  func.func @transform_1(%arg0: i32) -> (i32, i32) {
    %c0_i32 = arith.constant 0 : i32
    %c0_i32_0 = arith.constant 0 : i32
    %c0_i32_1 = arith.constant 0 : i32
    return %c0_i32, %c0_i32_0 : i32, i32
  }
  func.func @transform_2(%arg0: i32) -> (i32, i32) {
    %c0_i32 = arith.constant 0 : i32
    %c0_i32_0 = arith.constant 0 : i32
    %c0_i32_1 = arith.constant 0 : i32
    return %c0_i32, %c0_i32_0 : i32, i32
  }
  func.func @transform_3(%arg0: i32) -> (i32, i32) {
    %c0_i32 = arith.constant 0 : i32
    %c0_i32_0 = arith.constant 0 : i32
    %c0_i32_1 = arith.constant 0 : i32
    return %c0_i32, %c0_i32_0 : i32, i32
  }
  func.func @transform_4(%arg0: i32) -> (i32, i32) {
    %c0_i32 = arith.constant 0 : i32
    %c0_i32_0 = arith.constant 0 : i32
    %c0_i32_1 = arith.constant 0 : i32
    return %c0_i32, %c0_i32_0 : i32, i32
  }
  func.func @transform_5(%arg0: i32) -> (i32, i32) {
    %c0_i32 = arith.constant 0 : i32
    %c0_i32_0 = arith.constant 0 : i32
    %c0_i32_1 = arith.constant 0 : i32
    return %c0_i32, %c0_i32_0 : i32, i32
  }
  func.func @transform_6(%arg0: i32) -> (i32, i32) {
    %c0_i32 = arith.constant 0 : i32
    %c0_i32_0 = arith.constant 0 : i32
    %c0_i32_1 = arith.constant 0 : i32
    return %c0_i32, %c0_i32_0 : i32, i32
  }
  func.func @transform_7(%arg0: i32) -> (i32, i32) {
    %c0_i32 = arith.constant 0 : i32
    %c0_i32_0 = arith.constant 0 : i32
    %c0_i32_1 = arith.constant 0 : i32
    return %c0_i32, %c0_i32_0 : i32, i32
  }
  func.func @transform_8(%arg0: i32) -> (i32, i32) {
    %c0_i32 = arith.constant 0 : i32
    %c0_i32_0 = arith.constant 0 : i32
    return %c0_i32, %arg0 : i32, i32
  }
  func.func @transform_9(%arg0: i32) -> (i32, i32) {
    %c0_i32 = arith.constant 0 : i32
    %c0_i32_0 = arith.constant 0 : i32
    return %c0_i32, %arg0 : i32, i32
  }
  func.func @transform_10(%arg0: i32) -> (i32, i32) {
    %c0_i32 = arith.constant 0 : i32
    %c0_i32_0 = arith.constant 0 : i32
    %c0_i32_1 = arith.constant 0 : i32
    return %c0_i32, %c0_i32_0 : i32, i32
  }
}

</mosaic_0001>

<bundles_post_ra>
// kernel: tpu_custom_call.1
= control target key start
LH: loop header
LB: loop body
LE: loop exit
PB: predicated region body
PF: predicated region fallthrough
CT: control target
= control target key end

     0   :  { %s3342_s0 = inlined_call_operand.hbm [shape: f32[2,256], index: 0, kind: input, shape index: {}]   ;;  %s3343_s1 = inlined_call_operand.hbm [shape: f32[256,128], index: 1, kind: input, shape index: {}]   ;;  %s3344_s2 = inlined_call_operand.hbm [shape: f32[1,128], index: 2, kind: input, shape index: {}]   ;;  %s3345_s3 = inlined_call_operand.hbm [shape: f32[128,128], index: 3, kind: input, shape index: {}]   ;;  %s3346_s4 = inlined_call_operand.hbm [shape: f32[1,128], index: 4, kind: input, shape index: {}]   ;;  %s3347_s5 = inlined_call_operand.<no memory space> [shape: f32[1,1], index: 5, kind: input, shape index: {}]   ;;  %s3348_s6 = inlined_call_operand.hbm [shape: f32[64,3], index: 6, kind: input, shape index: {}]   ;;  %s3349_s7 = inlined_call_operand.hbm [shape: bf16[2,128], index: 7, kind: input, shape index: {}]   ;;  %s3350_s8 = inlined_call_operand.hbm [shape: f32[4,256], index: 8, kind: input, shape index: {}]   ;;  %s3351_s9 = inlined_call_operand.hbm [shape: f32[2,256], index: 9, kind: output, shape index: {0}]   ;;  %s3352_s10 = inlined_call_operand.hbm [shape: f32[2,128], index: 10, kind: output, shape index: {1}]  }
   0x1   :  { %v16_v0 = vstv %s3347_s5 }
   0x2   :  { %17 = vst [vmem:[#allocation3] sm:$0x1] %v16_v0 }
   0x3   :  { %18 = vsyncpa [#allocation5], 0 }
   0x4   :  { %19 = vsyncpa [#allocation8], 0 }
   0x5   :  { %20 = vsyncpa [#allocation11], 0 }
   0x6   :  { %21 = vsyncpa [#allocation14], 0 }
   0x7   :  { %22 = vsyncpa [#allocation17], 0 }
   0x8   :  { %23 = vsyncpa [#allocation6], 0 }
   0x9   :  { %24 = vsyncpa [#allocation20], 0  ;;  %s2298_s15 = smov [#allocation7]   ;;  %s2064_s19 = scalar_lea.hbm %s3343_s1, 4096 }
   0xa   :  { %s40_s16 = sshll.u32 %s2298_s15, 4  ;;  %p2065_p0 = scmp.ne.s32.totalorder %s3343_s1, %s2064_s19  ;;  %s41_s16 = int_to_ptr.vmem [resolvable:$true] %s40_s16 }
   0xb   :  { %p2068_p1 = scmp.lt.u32.totalorder %s2064_s19, %s3343_s1 }
   0xd   :  { %p2070_p2 = pnand %p2068_p1, %p2065_p0 }
   0xf   :  { %2073 = shalt.err (!%p2070_p2)
}
  0x10   :  { %s2074_s23 = scalar_lea.vmem %s41_s16, 4096  ;;  %p2079_p4 = scmp.lt.s32.totalorder %s41_s16, %s41_s16 }
  0x11   :  { %p2075_p3 = scmp.ne.s32.totalorder %s41_s16, %s2074_s23  ;;  %p2080_p5 = scmp.lt.s32.totalorder %s2074_s23, %s2074_s23 }
  0x13   :  { %p2081_p6 = por %p2080_p5, %p2079_p4 }
  0x15   :  { %p2082_p7 = pnand %p2081_p6, %p2075_p3 }
  0x17   :  { %2085 = shalt.err (!%p2082_p7)
}
  0x18   :  { %s2299_s24 = smov 128   ;;  %s2300_s25 = smov 8  }
  0x19   :  { %46 = dma.hbm_to_vmem [thread:$0]  %s3343_s1, 4096, %s41_s16, [#allocation8], %s2299_s24, %s2299_s24, %s2300_s25  }
  0x1a   :  { %s2301_s28 = smov [#allocation10]   ;;  %s2302_s30 = smov [#allocation13]  }
  0x1b   :  { %s62_s29 = sshll.u32 %s2301_s28, 4  ;;  %s86_s11 = sshll.u32 %s2302_s30, 4  ;;  %s63_s29 = int_to_ptr.vmem [resolvable:$true] %s62_s29  ;;  %s87_s11 = int_to_ptr.vmem [resolvable:$true] %s86_s11 }
  0x1c   :  { %s2086_s14 = scalar_lea.hbm %s3345_s3, 2048 }
  0x1d   :  { %p2087_p8 = scmp.ne.s32.totalorder %s3345_s3, %s2086_s14  ;;  %p2090_p9 = scmp.lt.u32.totalorder %s2086_s14, %s3345_s3 }
  0x1f   :  { %p2092_p10 = pnand %p2090_p9, %p2087_p8 }
  0x21   :  { %2095 = shalt.err (!%p2092_p10)
}
  0x22   :  { %s2096_s1 = scalar_lea.vmem %s63_s29, 2048  ;;  %p2101_p12 = scmp.lt.s32.totalorder %s63_s29, %s63_s29 }
  0x23   :  { %p2097_p11 = scmp.ne.s32.totalorder %s63_s29, %s2096_s1  ;;  %p2102_p13 = scmp.lt.s32.totalorder %s2096_s1, %s2096_s1 }
  0x25   :  { %p2103_p0 = por %p2102_p13, %p2101_p12 }
  0x27   :  { %p2104_p1 = pnand %p2103_p0, %p2097_p11 }
  0x29   :  { %2107 = shalt.err (!%p2104_p1)
}
  0x2a   :  { %68 = dma.hbm_to_vmem [thread:$0]  %s3345_s3, 2048, %s63_s29, [#allocation11], %s2299_s24, %s2299_s24, %s2300_s25  }
  0x2b   :  { %s2108_s22 = scalar_lea.hbm %s3348_s6, 1024 }
  0x2c   :  { %p2109_p2 = scmp.ne.s32.totalorder %s3348_s6, %s2108_s22  ;;  %p2112_p3 = scmp.lt.u32.totalorder %s2108_s22, %s3348_s6 }
  0x2e   :  { %p2114_p4 = pnand %p2112_p3, %p2109_p2 }
  0x30   :  { %2117 = shalt.err (!%p2114_p4)
}
  0x31   :  { %s2118_s30 = scalar_lea.vmem %s87_s11, 1024  ;;  %p2123_p6 = scmp.lt.s32.totalorder %s87_s11, %s87_s11 }
  0x32   :  { %p2119_p5 = scmp.ne.s32.totalorder %s87_s11, %s2118_s30  ;;  %p2124_p7 = scmp.lt.s32.totalorder %s2118_s30, %s2118_s30 }
  0x34   :  { %p2125_p8 = por %p2124_p7, %p2123_p6 }
  0x36   :  { %p2126_p9 = pnand %p2125_p8, %p2119_p5 }
  0x38   :  { %2129 = shalt.err (!%p2126_p9)
}
  0x39   :  { %92 = dma.hbm_to_vmem [thread:$0]  %s3348_s6, 1024, %s87_s11, [#allocation14], %s2299_s24, %s2299_s24, %s2300_s25  }
  0x3a   :  { %s2303_s12 = smov [#allocation4]   ;;  %s2304_s14 = smov [#allocation9]  }
  0x3b   :  { %s31_s13 = sshll.u32 %s2303_s12, 4  ;;  %s53_s15 = sshll.u32 %s2304_s14, 4  ;;  %s32_s13 = int_to_ptr.vmem [resolvable:$true] %s31_s13  ;;  %s54_s15 = int_to_ptr.vmem [resolvable:$true] %s53_s15 }
  0x3c   :  { %s2130_s19 = scalar_lea.hbm %s3342_s0, 64 }
  0x3d   :  { %p2131_p10 = scmp.ne.s32.totalorder %s3342_s0, %s2130_s19  ;;  %p2134_p11 = scmp.lt.u32.totalorder %s2130_s19, %s3342_s0 }
  0x3f   :  { %p2136_p12 = pnand %p2134_p11, %p2131_p10 }
  0x41   :  { %2139 = shalt.err (!%p2136_p12)
}
  0x42   :  { %s2140_s6 = scalar_lea.vmem %s32_s13, 64  ;;  %p2145_p0 = scmp.lt.s32.totalorder %s32_s13, %s32_s13 }
  0x43   :  { %p2141_p13 = scmp.ne.s32.totalorder %s32_s13, %s2140_s6  ;;  %p2146_p1 = scmp.lt.s32.totalorder %s2140_s6, %s2140_s6 }
  0x45   :  { %p2147_p2 = por %p2146_p1, %p2145_p0 }
  0x47   :  { %p2148_p3 = pnand %p2147_p2, %p2141_p13 }
  0x49   :  { %2151 = shalt.err (!%p2148_p3)
}
  0x4a   :  { %34 = dma.hbm_to_vmem [thread:$0]  %s3342_s0, 64, %s32_s13, [#allocation5]  }
  0x4b   :  { %s2152_s22 = scalar_lea.hbm %s3344_s2, 16 }
  0x4c   :  { %p2153_p4 = scmp.ne.s32.totalorder %s3344_s2, %s2152_s22  ;;  %p2156_p5 = scmp.lt.u32.totalorder %s2152_s22, %s3344_s2 }
  0x4e   :  { %p2158_p6 = pnand %p2156_p5, %p2153_p4 }
  0x50   :  { %2161 = shalt.err (!%p2158_p6)
}
  0x51   :  { %s2162_s30 = scalar_lea.vmem %s54_s15, 16  ;;  %s2166_s3 = scalar_lea.vmem %s54_s15, 32 }
  0x52   :  { %p2163_p7 = scmp.ne.s32.totalorder %s54_s15, %s2162_s30  ;;  %p2167_p8 = scmp.lt.s32.totalorder %s54_s15, %s54_s15 }
  0x53   :  { %p2168_p9 = scmp.lt.s32.totalorder %s2166_s3, %s2162_s30 }
  0x55   :  { %p2169_p10 = por %p2168_p9, %p2167_p8 }
  0x57   :  { %p2170_p11 = pnand %p2169_p10, %p2163_p7 }
  0x59   :  { %2173 = shalt.err (!%p2170_p11)
}
  0x5a   :  { %56 = dma.hbm_to_vmem [thread:$0]  %s3344_s2, 16, %s54_s15, [#allocation8]  }
  0x5b   :  { %s2305_s12 = smov [#allocation12]   ;;  %s2306_s14 = smov [#allocation15]  }
  0x5c   :  { %s75_s13 = sshll.u32 %s2305_s12, 4  ;;  %s99_s17 = sshll.u32 %s2306_s14, 4  ;;  %s76_s13 = int_to_ptr.vmem [resolvable:$true] %s75_s13  ;;  %s100_s17 = int_to_ptr.vmem [resolvable:$true] %s99_s17 }
  0x5d   :  { %s2174_s1 = scalar_lea.hbm %s3346_s4, 16 }
  0x5e   :  { %p2175_p12 = scmp.ne.s32.totalorder %s3346_s4, %s2174_s1  ;;  %p2178_p13 = scmp.lt.u32.totalorder %s2174_s1, %s3346_s4 }
  0x60   :  { %p2180_p0 = pnand %p2178_p13, %p2175_p12 }
  0x62   :  { %2183 = shalt.err (!%p2180_p0)
}
  0x63   :  { %s2184_s2 = scalar_lea.vmem %s76_s13, 16  ;;  %s2188_s15 = scalar_lea.vmem %s76_s13, 32 }
  0x64   :  { %p2185_p1 = scmp.ne.s32.totalorder %s76_s13, %s2184_s2  ;;  %p2189_p2 = scmp.lt.s32.totalorder %s76_s13, %s76_s13 }
  0x65   :  { %p2190_p3 = scmp.lt.s32.totalorder %s2188_s15, %s2184_s2 }
  0x67   :  { %p2191_p4 = por %p2190_p3, %p2189_p2 }
  0x69   :  { %p2192_p5 = pnand %p2191_p4, %p2185_p1 }
  0x6b   :  { %2195 = shalt.err (!%p2192_p5)
}
  0x6c   :  { %78 = dma.hbm_to_vmem [thread:$0]  %s3346_s4, 16, %s76_s13, [#allocation11]  }
  0x6d   :  { %s2196_s22 = scalar_lea.hbm %s3349_s7, 16 }
  0x6e   :  { %p2197_p6 = scmp.ne.s32.totalorder %s3349_s7, %s2196_s22  ;;  %p2200_p7 = scmp.lt.u32.totalorder %s2196_s22, %s3349_s7 }
  0x70   :  { %p2202_p8 = pnand %p2200_p7, %p2197_p6 }
  0x72   :  { %2205 = shalt.err (!%p2202_p8)
}
  0x73   :  { %s2206_s30 = scalar_lea.vmem %s100_s17, 16  ;;  %s2210_s3 = scalar_lea.vmem %s100_s17, 32 }
  0x74   :  { %p2207_p9 = scmp.ne.s32.totalorder %s100_s17, %s2206_s30  ;;  %p2211_p10 = scmp.lt.s32.totalorder %s100_s17, %s100_s17 }
  0x75   :  { %p2212_p11 = scmp.lt.s32.totalorder %s2210_s3, %s2206_s30 }
  0x77   :  { %p2213_p12 = por %p2212_p11, %p2211_p10 }
  0x79   :  { %p2214_p13 = pnand %p2213_p12, %p2207_p9 }
  0x7b   :  { %2217 = shalt.err (!%p2214_p13)
}
  0x7c   :  { %102 = dma.hbm_to_vmem [thread:$0]  %s3349_s7, 16, %s100_s17, [#allocation14]  }
  0x7d   :  { %s2307_s29 = smov [#allocation16]   ;;  %s2218_s18 = scalar_lea.hbm %s3350_s8, 128 }
  0x7e   :  { %s109_s12 = sshll.u32 %s2307_s29, 4  ;;  %p2219_p0 = scmp.ne.s32.totalorder %s3350_s8, %s2218_s18  ;;  %s110_s12 = int_to_ptr.vmem [resolvable:$true] %s109_s12 }
  0x7f   :  { %p2222_p1 = scmp.lt.u32.totalorder %s2218_s18, %s3350_s8 }
  0x81   :  { %p2224_p2 = pnand %p2222_p1, %p2219_p0 }
  0x83   :  { %2227 = shalt.err (!%p2224_p2)
}
  0x84   :  { %s2228_s21 = scalar_lea.vmem %s110_s12, 128  ;;  %p2233_p4 = scmp.lt.s32.totalorder %s110_s12, %s110_s12 }
  0x85   :  { %p2229_p3 = scmp.ne.s32.totalorder %s110_s12, %s2228_s21  ;;  %p2234_p5 = scmp.lt.s32.totalorder %s2228_s21, %s2228_s21 }
  0x87   :  { %p2235_p6 = por %p2234_p5, %p2233_p4 }
  0x89   :  { %p2236_p7 = pnand %p2235_p6, %p2229_p3 }
  0x8b   :  { %2239 = shalt.err (!%p2236_p7)
}
  0x8c   :  { %112 = dma.hbm_to_vmem [thread:$0]  %s3350_s8, 128, %s110_s12, [#allocation17]  }
  0x8d   :  { %2284 = dma.done.wait [#allocation5], 64  }
  0x8e   :  { %2285 = vsyncadd [#allocation5], 4294967232 }
  0x8f   :  { %2286 = dma.done.wait [#allocation8], 4112  }
  0x90   :  { %2287 = vsyncadd [#allocation8], 4294963184 }
  0x91   :  { %2288 = dma.done.wait [#allocation11], 2064  }
  0x92   :  { %2289 = vsyncadd [#allocation11], 4294965232 }
  0x93   :  { %2290 = dma.done.wait [#allocation14], 1040  }
  0x94   :  { %2291 = vsyncadd [#allocation14], 4294966256 }
  0x95   :  { %2292 = dma.done.wait [#allocation17], 128  }
  0x96   :  { %2293 = vsyncadd [#allocation17], 4294967168  ;;  %v2308_v1 = vmov 0.0|0.0   ;;  %v159_v2 = vld [vmem:[#allocation7 + $0x80] sm:$0xff]  ;;  %v160_v3 = vld [vmem:[#allocation7 + $0x88] sm:$0xff]  ;;  %vm2309_vm0 = vmmov 0  }
  0x97   :  { %1932 = vmatprep.subr.bf16.mxu1 %v2308_v1  ;;  %v143_v4 = vld [vmem:[#allocation7] sm:$0xff]  ;;  %v1900_v5 = vpack.c.bf16 %v160_v3, %v159_v2  ;;  %v144_v6 = vld [vmem:[#allocation7 + $0x8] sm:$0xff]  ;;  %v161_v7 = vld [vmem:[#allocation7 + $0x90] sm:$0xff]  ;;  %s2311_s8 = smov 127   ;;  %s2312_s6 = smov 126   ;;  %vm1457_vm1 = vcmask 1043456  }
  0x98   :  { %v162_v8 = vld [vmem:[#allocation7 + $0x98] sm:$0xff]  ;;  %v1902_v9 = vpack.c.bf16 %v144_v6, %v143_v4  ;;  %v145_v11 = vld [vmem:[#allocation7 + $0x10] sm:$0xff]  ;;  %v163_v13 = vld [vmem:[#allocation7 + $0xa0] sm:$0xff]  ;;  %s2313_s2 = smov 125   ;;  %s2314_s15 = smov 1   ;;  %vm899_vm2 = vcmask 7168  }
  0x99   :  { %v1904_v10 = vpack.c.bf16 %v162_v8, %v161_v7  ;;  %v146_v12 = vld [vmem:[#allocation7 + $0x18] sm:$0xff]  ;;  %1901 = vmatprep.subr.bf16.mxu0 %v1900_v5  ;;  %v164_v14 = vld [vmem:[#allocation7 + $0xa8] sm:$0xff]  ;;  %v147_v17 = vld [vmem:[#allocation7 + $0x20] sm:$0xff]  ;;  %s2315_s24 = smov 2   ;;  %s2316_s25 = smov 4   ;;  %vm908_vm3 = vcmask 15360  }
  0x9a   :  { %1903 = vmatpush3.bf16.msra.mxu0 %v1902_v9  ;;  %v1906_v15 = vpack.c.bf16 %v146_v12, %v145_v11  ;;  %v1908_v16 = vpack.c.bf16 %v164_v14, %v163_v13  ;;  %v148_v18 = vld [vmem:[#allocation7 + $0x28] sm:$0xff]  ;;  %v165_v19 = vld [vmem:[#allocation7 + $0xb0] sm:$0xff]  ;;  %v166_v20 = vld [vmem:[#allocation7 + $0xb8] sm:$0xff]  ;;  %v2310_v13 = vmov 0.0   ;;  %s2317_s11 = smov 5   ;;  %s2318_s5 = smov 3  }
  0x9b   :  { %1905 = vmatprep.subr.bf16.mxu0 %v1904_v10  ;;  %v1910_v21 = vpack.c.bf16 %v148_v18, %v147_v17  ;;  %v1912_v22 = vpack.c.bf16 %v166_v20, %v165_v19  ;;  %v149_v23 = vld [vmem:[#allocation7 + $0x30] sm:$0xff]  ;;  %v150_v24 = vld [vmem:[#allocation7 + $0x38] sm:$0xff]  ;;  %v167_v25 = vld [vmem:[#allocation7 + $0xc0] sm:$0xff]  ;;  %1897 = vmatprep.mubr.msk.f32.mxu1 %vm2309_vm0, %v2310_v13  ;;  %s2319_s22 = smov 124   ;;  %s2320_s23 = smov 121   ;;  %vm917_vm4 = vcmask 23552  }
  0x9c   :  { %v168_v26 = vld [vmem:[#allocation7 + $0xc8] sm:$0xff]  ;;  %v2489_v27 = vld.sshfl [vmem:[#allocation4] sm:$0x33 pattern:$0x76325410]  ;;  %v266_v31 = vld [vmem:[#allocation10 + $0x10] sm:$0xff]  ;;  %v1914_v32 = vpack.c.bf16 %v150_v24, %v149_v23 }
  0x9d   :  { %v190_v28 = vcombine.high %v2489_v27, %v2489_v27  ;;  %v264_v29 = vld [vmem:[#allocation10] sm:$0xff]  ;;  %v265_v30 = vld [vmem:[#allocation10 + $0x8] sm:$0xff]  ;;  %v267_v34 = vld [vmem:[#allocation10 + $0x18] sm:$0xff]  ;;  %v1916_v35 = vpack.c.bf16 %v168_v26, %v167_v25  ;;  %s2321_s26 = smov 119   ;;  %vm1361_vm5 = vcmask 31744   ;;  %s2323_s27 = smov [#allocation19]  }
  0x9e   :  { %1907 = vmatpush3.bf16.msra.mxu0 %v1906_v15  ;;  %v1933_v33 = vpack.c.bf16 %v265_v30, %v264_v29  ;;  %v151_v36 = vld [vmem:[#allocation7 + $0x40] sm:$0xff]  ;;  %v152_v37 = vld [vmem:[#allocation7 + $0x48] sm:$0xff]  ;;  %v169_v38 = vld [vmem:[#allocation7 + $0xd0] sm:$0xff]  ;;  %v1936_v40 = vpack.c.bf16 %v267_v34, %v266_v31  ;;  %s1773_s28 = sshll.u32 %s2323_s27, 4  ;;  %s1774_s28 = int_to_ptr.vmem [resolvable:$true] %s1773_s28 }
  0x9f   :  { %1909 = vmatprep.subr.bf16.mxu0 %v1908_v16  ;;  %257 = vmatprep.mubr.f32.mxu0 %v190_v28  ;;  %v170_v39 = vld [vmem:[#allocation7 + $0xd8] sm:$0xff]  ;;  %v268_v41 = vld [vmem:[#allocation10 + $0x20] sm:$0xff]  ;;  %v269_v42 = vld [vmem:[#allocation10 + $0x28] sm:$0xff]  ;;  %v1918_v43 = vpack.c.bf16 %v152_v37, %v151_v36  ;;  %s2240_s30 = scalar_lea.vmem %s1774_s28, 32  ;;  %p2245_p9 = scmp.lt.s32.totalorder %s1774_s28, %s1774_s28 }
  0xa0   :  { %1934 = vmatpush3.bf16.msra.mxu1 %v1933_v33  ;;  %v1920_v44 = vpack.c.bf16 %v170_v39, %v169_v38  ;;  %v153_v45 = vld [vmem:[#allocation7 + $0x50] sm:$0xff]  ;;  %v154_v46 = vld [vmem:[#allocation7 + $0x58] sm:$0xff]  ;;  %v171_v47 = vld [vmem:[#allocation7 + $0xe0] sm:$0xff]  ;;  %v1939_v49 = vpack.c.bf16 %v269_v42, %v268_v41  ;;  %p2241_p8 = scmp.ne.s32.totalorder %s1774_s28, %s2240_s30  ;;  %p2246_p10 = scmp.lt.s32.totalorder %s2240_s30, %s2240_s30 }
  0xa1   :  { %1935 = vmatprep.subr.bf16.mxu1 %v2308_v1  ;;  %v172_v48 = vld [vmem:[#allocation7 + $0xe8] sm:$0xff]  ;;  %v270_v50 = vld [vmem:[#allocation10 + $0x30] sm:$0xff]  ;;  %v271_v51 = vld [vmem:[#allocation10 + $0x38] sm:$0xff]  ;;  %v1922_v52 = vpack.c.bf16 %v154_v46, %v153_v45 }
  0xa2   :  { %1911 = vmatpush3.bf16.msra.mxu0 %v1910_v21  ;;  %v1924_v53 = vpack.c.bf16 %v172_v48, %v171_v47  ;;  %v155_v54 = vld [vmem:[#allocation7 + $0x60] sm:$0xff]  ;;  %v156_v55 = vld [vmem:[#allocation7 + $0x68] sm:$0xff]  ;;  %v173_v56 = vld [vmem:[#allocation7 + $0xf0] sm:$0xff]  ;;  %v1942_v58 = vpack.c.bf16 %v271_v51, %v270_v50  ;;  %p2247_p11 = por %p2246_p10, %p2245_p9 }
  0xa3   :  { %1913 = vmatprep.subr.bf16.mxu0 %v1912_v22  ;;  %v174_v57 = vld [vmem:[#allocation7 + $0xf8] sm:$0xff]  ;;  %v272_v59 = vld [vmem:[#allocation10 + $0x40] sm:$0xff]  ;;  %v273_v60 = vld [vmem:[#allocation10 + $0x48] sm:$0xff]  ;;  %v1926_v61 = vpack.c.bf16 %v156_v55, %v155_v54 }
  0xa4   :  { %1937 = vmatpush3.bf16.msra.mxu1 %v1936_v40  ;;  %v1928_v62 = vpack.c.bf16 %v174_v57, %v173_v56  ;;  %v157_v63 = vld [vmem:[#allocation7 + $0x70] sm:$0xff]  ;;  %v158_v0 = vld [vmem:[#allocation7 + $0x78] sm:$0xff]  ;;  %v1945_v2 = vpack.c.bf16 %v273_v60, %v272_v59  ;;  %v276_v7 = vld [vmem:[#allocation10 + $0x60] sm:$0xff]  ;;  %p2248_p12 = pnand %p2247_p11, %p2241_p8 }
  0xa5   :  { %1938 = vmatprep.subr.bf16.mxu1 %v2308_v1  ;;  %v274_v3 = vld [vmem:[#allocation10 + $0x50] sm:$0xff]  ;;  %v275_v4 = vld [vmem:[#allocation10 + $0x58] sm:$0xff]  ;;  %v1930_v5 = vpack.c.bf16 %v158_v0, %v157_v63  ;;  %v277_v8 = vld [vmem:[#allocation10 + $0x68] sm:$0xff] }
  0xa6   :  { %1915 = vmatpush3.bf16.msra.mxu0 %v1914_v32  ;;  %v1948_v6 = vpack.c.bf16 %v275_v4, %v274_v3  ;;  %v1951_v9 = vpack.c.bf16 %v277_v8, %v276_v7  ;;  %v278_v10 = vld [vmem:[#allocation10 + $0x70] sm:$0xff]  ;;  %v279_v11 = vld [vmem:[#allocation10 + $0x78] sm:$0xff]  ;;  %v1792_v20 = vld [vmem:[#allocation12] ss:$0 sm:$0xff] }
  0xa7   :  { %1917 = vmatprep.subr.bf16.mxu0 %v1916_v35  ;;  %v1954_v12 = vpack.c.bf16 %v279_v11, %v278_v10  ;;  %v1790_v15 = vld [vmem:[#allocation9] ss:$0 sm:$0xff]  ;;  %v1793_v3 = vld [vmem:[#allocation3] ss:$0 sm:$0xff] }
  0xa8   :  { %1940 = vmatpush3.bf16.msra.mxu1 %v1939_v49 }
  0xa9   :  { %1941 = vmatprep.subr.bf16.mxu1 %v2308_v1 }
  0xaa   :  { %1919 = vmatpush3.bf16.msra.mxu0 %v1918_v43 }
  0xab   :  { %1921 = vmatprep.subr.bf16.mxu0 %v1920_v44 }
  0xac   :  { %1943 = vmatpush3.bf16.msra.mxu1 %v1942_v58 }
  0xad   :  { %1944 = vmatprep.subr.bf16.mxu1 %v2308_v1 }
  0xae   :  { %1923 = vmatpush3.bf16.msra.mxu0 %v1922_v52 }
  0xaf   :  { %1925 = vmatprep.subr.bf16.mxu0 %v1924_v53 }
  0xb0   :  { %1946 = vmatpush3.bf16.msra.mxu1 %v1945_v2 }
  0xb1   :  { %1947 = vmatprep.subr.bf16.mxu1 %v2308_v1 }
  0xb2   :  { %1927 = vmatpush3.bf16.msra.mxu0 %v1926_v61 }
  0xb3   :  { %1929 = vmatprep.subr.bf16.mxu0 %v1928_v62  ;;  %v488_v62 = vlaneseq }
  0xb4   :  { %1949 = vmatpush3.bf16.msra.mxu1 %v1948_v6 }
  0xb5   :  { %1950 = vmatprep.subr.bf16.mxu1 %v2308_v1  ;;  %v489_v63 = vshrl.u32 %v488_v62, 7  ;;  %v2652_v62 = vld [vmem:[#allocation13 + $0x28] sm:$0xff] }
  0xb6   :  { %1931 = vmatpush3.bf16.msra.mxu0 %v1930_v5 }
  0xb7   :  { %v2548_v2 = vsub.s32 0, %v489_v63  ;;  %v2555_v6 = vsub.s32 1, %v489_v63 }
  0xb8   :  { %1952 = vmatpush3.bf16.msra.mxu1 %v1951_v9 }
  0xb9   :  { %258 = vmatmul.mubr.f32.vlgmr.msra.gmra.mrb[0].mxu0 %v2489_v27  ;;  %1953 = vmatprep.subr.bf16.mxu1 %v2308_v1 }
  0xba   :  { %1526 = vmatprep.mubr.f32.mxu0 %v2310_v13 }
  0xbc   :  { %1955 = vmatpush3.bf16.msra.mxu1 %v1954_v12 }
 0x18c   :  { %v1845_v14 = vpop.f32.mrb[0].mxu0 }
 0x18d   :  { %v1846_v16 = vpop.f32.mrb[1].mxu0 }
 0x18e   :  { %v1847_v17 = vadd.f32 %v1846_v16, %v1845_v14 }
 0x190   :  { %v260_v18 = vadd.f32 %v1847_v17, %v1790_v15 }
 0x192   :  { %v263_v19 = vmax.f32 %v260_v18, 0.0 }
 0x194   :  { %1898 = vmatmul.mubr.f32.vlgmr.msra.gmra.mrb[0].mxu1 %v263_v19 }
 0x267   :  { %v353_v21 = vpop.f32.mrb[0].mxu1 }
 0x268   :  { %v2503_v1 = vadd.f32 %v1792_v20, %v353_v21  ;;  %v1899_v22 = vpop.f32.mrb[1].mxu1 }
 0x269   :  { %v2569_v22 = vld [vmem:[#allocation13] sm:$0xff] }
 0x26a   :  { %v385_v23 = vmul.f32 %v2503_v1, %v2503_v1  ;;  %v364_v10 = vand.u32 2147483647, %v2503_v1  ;;  %v371_v18 = vmax.f32 %v2503_v1, 0.0 }
 0x26c   :  { %387 = vrot.lane.b32.xlu0 %v385_v23, %s2311_s8  ;;  %v365_v11 = vsub.f32 0.0, %v364_v10  ;;  %v2678_v10 = vld [vmem:[#allocation13 + $0x38] sm:$0xff] }
 0x26e   :  { %v366_v12 = vmul.f32 1.442695, %v365_v11 }
 0x270   :  { %391 = vrot.lane.b32.xlu0 %v385_v23, %s2312_s6 }
 0x274   :  { %408 = vrot.lane.b32.xlu0 %v2503_v1, %s2313_s2 }
 0x2de   :  { %v388_v24 = vpop.permute.xlu0 %387 }
 0x2df   :  { %v390_v25 = vadd.f32 %v388_v24, %v385_v23 }
 0x2e2   :  { %v392_v26 = vpop.permute.xlu0 %391 }
 0x2e3   :  { %v394_v27 = vadd.f32 %v392_v26, %v390_v25 }
 0x2e5   :  { %v395_v28 = vadd.f32 1e-12, %v394_v27 }
 0x2e6   :  { %v409_v32 = vpop.permute.xlu0 %408 }
 0x2e7   :  { %1984 = vrsqrt.f32 %v395_v28 }
 0x2f1   :  { %v1985_v29 = vpop.eup %1984 }
 0x2f2   :  { %399 = vrot.lane.b32.xlu1 %v1985_v29, %s2314_s15  ;;  %v2520_v37 = vmul.f32 %v1985_v29, %v2503_v1 }
 0x2f4   :  { %v411_v39 = vmul.f32 %v409_v32, %v2520_v37  ;;  %v491_v9 = vrot.slane %v2520_v37, %v2548_v2 }
 0x2f6   :  { %403 = vrot.lane.b32.xlu1 %v1985_v29, %s2315_s24 }
 0x364   :  { %v400_v30 = vpop.permute.xlu1 %399 }
 0x365   :  { %v402_v31 = vmul.f32 %v400_v30, %v2503_v1  ;;  %v2582_v30 = vld [vmem:[#allocation13 + $0x8] sm:$0xff] }
 0x367   :  { %v412_v33 = vmul.f32 %v409_v32, %v402_v31  ;;  %v507_v4 = vrot.slane %v402_v31, %v2548_v2  ;;  %v945_v7 = vrot.slane %v402_v31, %v2555_v6 }
 0x368   :  { %v404_v34 = vpop.permute.xlu1 %403 }
 0x369   :  { %v406_v35 = vmul.f32 %v404_v34, %v2503_v1  ;;  %414 = vrot.lane.b32.xlu1 %v412_v33, %s2311_s8  ;;  %v2588_v34 = vld [vmem:[#allocation13 + $0x10] sm:$0xff] }
 0x36b   :  { %v418_v36 = vmul.f32 %v409_v32, %v406_v35  ;;  %v563_v5 = vrot.slane %v406_v35, %v2548_v2  ;;  %v1001_v8 = vrot.slane %v406_v35, %v2555_v6 }
 0x36d   :  { %420 = vrot.lane.b32.xlu0 %v418_v36, %s2312_s6  ;;  %431 = vrot.lane.b32.xlu1 %v402_v31, %s2311_s8 }
 0x371   :  { %441 = vrot.lane.b32.xlu0 %v406_v35, %s2312_s6 }
 0x3db   :  { %v415_v38 = vpop.permute.xlu1 %414 }
 0x3dc   :  { %v417_v40 = vadd.f32 %v415_v38, %v411_v39 }
 0x3df   :  { %v421_v41 = vpop.permute.xlu0 %420  ;;  %v432_v43 = vpop.permute.xlu1 %431 }
 0x3e0   :  { %v423_v42 = vadd.f32 %v421_v41, %v417_v40 }
 0x3e2   :  { %v434_v44 = vmul.f32 %v432_v43, %v423_v42  ;;  %v424_v47 = vmul.f32 %v423_v42, %v2520_v37 }
 0x3e3   :  { %v442_v45 = vpop.permute.xlu0 %441 }
 0x3e4   :  { %v444_v46 = vmul.f32 %v442_v45, %v423_v42  ;;  %436 = vrot.lane.b32.xlu1 %v434_v44, %s2316_s25 }
 0x3e6   :  { %446 = vrot.lane.b32.xlu0 %v444_v46, %s2317_s11 }
 0x3e8   :  { %426 = vrot.lane.b32.xlu1 %v424_v47, %s2318_s5 }
 0x456   :  { %v437_v48 = vpop.permute.xlu1 %436 }
 0x457   :  { %v2526_v49 = vsub.f32 %v2503_v1, %v437_v48  ;;  %v2621_v48 = vld [vmem:[#allocation13 + $0x18] sm:$0xff] }
 0x458   :  { %v447_v50 = vpop.permute.xlu0 %446 }
 0x459   :  { %v451_v51 = vmul.f32 %v2526_v49, %v2526_v49  ;;  %v2531_v52 = vsub.f32 %v2503_v1, %v447_v50 }
 0x45a   :  { %v427_v54 = vpop.permute.xlu1 %426 }
 0x45b   :  { %v457_v53 = vmul.f32 %v2531_v52, %v2531_v52  ;;  %453 = vrot.lane.b32.xlu0 %v451_v51, %s2311_s8  ;;  %v2538_v55 = vsub.f32 %v2503_v1, %v427_v54 }
 0x45d   :  { %459 = vrot.lane.b32.xlu1 %v457_v53, %s2312_s6  ;;  %v450_v56 = vmul.f32 %v2538_v55, %v2538_v55 }
 0x4cd   :  { %v454_v57 = vpop.permute.xlu0 %453 }
 0x4ce   :  { %v456_v58 = vadd.f32 %v454_v57, %v450_v56  ;;  %v2639_v57 = vld [vmem:[#allocation13 + $0x20] sm:$0xff] }
 0x4cf   :  { %v460_v59 = vpop.permute.xlu1 %459 }
 0x4d0   :  { %v462_v60 = vadd.f32 %v460_v59, %v456_v58 }
 0x4d2   :  { %v463_v61 = vadd.f32 1e-12, %v462_v60 }
 0x4d4   :  { %1986 = vrsqrt.f32 %v463_v61 }
 0x4d5   :  { %1988 = vpow2.f32 %v366_v12  ;;  %v929_v12 = vrot.slane %v2520_v37, %v2555_v6 }
 0x4de   :  { %v2542_v0 = vpop.eup %1986 }
 0x4df   :  { %471 = vrot.lane.b32.xlu1 %v2542_v0, %s2315_s24  ;;  %467 = vrot.lane.b32.xlu0 %v2542_v0, %s2314_s15  ;;  %v1989_v14 = vpop.eup %1988  ;;  %v465_v50 = vmul.f32 %v2542_v0, %v2538_v55 }
 0x4e0   :  { %v368_v15 = vadd.f32 1.0, %v1989_v14 }
 0x4e1   :  { %v1069_v53 = vrot.slane %v465_v50, %v2555_v6 }
 0x4e2   :  { %1990 = vlog2.f32 %v368_v15 }
 0x4e3   :  { %509 = vrot.lane.b32.xlu1 %v507_v4, %s2319_s22  ;;  %381 = vrot.lane.b32.xlu0 %v1793_v3, %s2318_s5  ;;  %1992 = vtanh.f32 %v2503_v1  ;;  %v631_v3 = vrot.slane %v465_v50, %v2548_v2 }
 0x4e7   :  { %565 = vrot.lane.b32.xlu1 %v563_v5, %s2319_s22 }
 0x4eb   :  { %947 = vrot.lane.b32.xlu1 %v945_v7, %s2319_s22 }
 0x4ec   :  { %v1991_v16 = vpop.eup %1990 }
 0x4ed   :  { %v370_v17 = vmul.f32 0.6931472, %v1991_v16  ;;  %v1993_v33 = vpop.eup %1992 }
 0x4ee   :  { %v2596_v38 = vmul.f32 10.0, %v1993_v33 }
 0x4ef   :  { %1003 = vrot.lane.b32.xlu1 %v1001_v8, %s2319_s22  ;;  %v372_v19 = vadd.f32 %v371_v18, %v370_v17 }
 0x4f0   :  { %v2602_v39 = vrot.slane %v2596_v38, %v2548_v2  ;;  %v2705_v18 = vrot.slane %v2596_v38, %v2555_v6 }
 0x4f1   :  { %v374_v23 = vadd.f32 1.0, %v372_v19 }
 0x4f3   :  { %493 = vrot.lane.b32.xlu1 %v491_v9, %s2319_s22  ;;  %v2670_v9 = vld [vmem:[#allocation13 + $0x30] sm:$0xff] }
 0x551   :  { %v2566_v20 = vpop.permute.xlu1 %471  ;;  %v468_v21 = vpop.permute.xlu0 %467 }
 0x552   :  { %v470_v0 = vmul.f32 %v468_v21, %v2526_v49  ;;  %v474_v4 = vmul.f32 %v2566_v20, %v2531_v52 }
 0x554   :  { %v647_v5 = vrot.slane %v470_v0, %v2548_v2  ;;  %v703_v7 = vrot.slane %v474_v4, %v2548_v2  ;;  %v1085_v14 = vrot.slane %v470_v0, %v2555_v6  ;;  %v1141_v15 = vrot.slane %v474_v4, %v2555_v6 }
 0x555   :  { %v2571_v24 = vpop.permute.xlu1 %509  ;;  %v382_v25 = vpop.permute.xlu0 %381 }
 0x556   :  { %v2573_v26 = vmul.f32 %v382_v25, %v374_v23  ;;  %v512_v27 = vmul.f32 %v2571_v24, %v2569_v22  ;;  %v513_v35 = vmul.f32 %v2571_v24, %v2582_v30  ;;  %v514_v36 = vmul.f32 %v2571_v24, %v2588_v34 }
 0x557   :  { %v515_v51 = vmul.f32 %v2571_v24, %v2621_v48  ;;  %v516_v58 = vmul.f32 %v2571_v24, %v2639_v57  ;;  %v517_v63 = vmul.f32 %v2571_v24, %v2652_v62  ;;  %v518_v49 = vmul.f32 %v2571_v24, %v2670_v9 }
 0x558   :  { %v475_v28 = vmul.f32 %v2573_v26, %v2573_v26  ;;  %528 = vrot.lane.b32.xlu1 %v512_v27, %s2311_s8 }
 0x559   :  { %v2580_v29 = vpop.permute.xlu1 %565 }
 0x55a   :  { %1994 = vrcp.f32 %v475_v28  ;;  %v568_v31 = vmul.f32 %v2580_v29, %v2569_v22  ;;  %v569_v32 = vmul.f32 %v2580_v29, %v2582_v30  ;;  %v570_v42 = vmul.f32 %v2580_v29, %v2588_v34 }
 0x55b   :  { %v571_v55 = vmul.f32 %v2580_v29, %v2621_v48  ;;  %v572_v60 = vmul.f32 %v2580_v29, %v2639_v57  ;;  %v573_v8 = vmul.f32 %v2580_v29, %v2652_v62  ;;  %v574_v52 = vmul.f32 %v2580_v29, %v2670_v9 }
 0x55c   :  { %584 = vrot.lane.b32.xlu1 %v568_v31, %s2312_s6  ;;  %586 = vrot.lane.b32.xlu0 %v569_v32, %s2312_s6  ;;  %v575_v11 = vmul.f32 %v2580_v29, %v2678_v10 }
 0x55d   :  { %v2613_v45 = vpop.permute.xlu1 %947 }
 0x55e   :  { %v952_v59 = vmul.f32 %v2613_v45, %v2588_v34  ;;  %v950_v16 = vmul.f32 %v2613_v45, %v2569_v22  ;;  %v951_v37 = vmul.f32 %v2613_v45, %v2582_v30 }
 0x560   :  { %530 = vrot.lane.b32.xlu1 %v513_v35, %s2311_s8  ;;  %532 = vrot.lane.b32.xlu0 %v514_v36, %s2311_s8 }
 0x561   :  { %v2631_v54 = vpop.permute.xlu1 %1003 }
 0x562   :  { %v1007_v56 = vmul.f32 %v2631_v54, %v2582_v30  ;;  %v1006_v17 = vmul.f32 %v2631_v54, %v2569_v22 }
 0x564   :  { %v1995_v40 = vpop.eup %1994  ;;  %757 = vrot.lane.b32.xlu1 %v2602_v39, %s2311_s8 }
 0x565   :  { %v2606_v41 = vmul.f32 0.5, %v1995_v40 }
 0x567   :  { %v478_v43 = vmul.f32 2.0, %v2606_v41  ;;  %v479_v44 = vsub.f32 0.0, %v2606_v41  ;;  %v955_v41 = vmul.f32 %v2613_v45, %v2652_v62 }
 0x568   :  { %588 = vrot.lane.b32.xlu1 %v570_v42, %s2312_s6 }
 0x569   :  { %v771_v46 = vrot.slane %v478_v43, %v2548_v2  ;;  %v2619_v47 = vrot.slane %v479_v44, %v2548_v2  ;;  %v1209_v61 = vrot.slane %v478_v43, %v2555_v6  ;;  %v519_v2 = vmul.f32 %v2571_v24, %v2678_v10  ;;  %v2717_v24 = vpop.permute.xlu1 %493 }
 0x56b   :  { %773 = vrot.lane.b32.xlu0 %v771_v46, %s2313_s2 }
 0x56c   :  { %821 = vrot.lane.b32.xlu1 %v2619_v47, %s2313_s2 }
 0x56f   :  { %534 = vrot.lane.b32.xlu0 %v515_v51, %s2311_s8 }
 0x570   :  { %1071 = vrot.lane.b32.xlu1 %v1069_v53, %s2320_s23 }
 0x573   :  { %590 = vrot.lane.b32.xlu0 %v571_v55, %s2312_s6 }
 0x574   :  { %1024 = vrot.lane.b32.xlu1 %v1007_v56, %s2312_s6 }
 0x577   :  { %536 = vrot.lane.b32.xlu0 %v516_v58, %s2311_s8 }
 0x578   :  { %970 = vrot.lane.b32.xlu1 %v952_v59, %s2311_s8  ;;  %v502_v59 = vmul.f32 %v2717_v24, %v2670_v9 }
 0x57b   :  { %592 = vrot.lane.b32.xlu0 %v572_v60, %s2312_s6  ;;  %v1008_v60 = vmul.f32 %v2631_v54, %v2588_v34 }
 0x57c   :  { %1211 = vrot.lane.b32.xlu1 %v1209_v61, %s2313_s2  ;;  %v953_v61 = vmul.f32 %v2613_v45, %v2621_v48 }
 0x57f   :  { %538 = vrot.lane.b32.xlu0 %v517_v63, %s2311_s8 }
 0x583   :  { %633 = vrot.lane.b32.xlu0 %v631_v3, %s2320_s23 }
 0x587   :  { %649 = vrot.lane.b32.xlu0 %v647_v5, %s2320_s23  ;;  %v1009_v5 = vmul.f32 %v2631_v54, %v2621_v48 }
 0x58b   :  { %705 = vrot.lane.b32.xlu0 %v703_v7, %s2320_s23 }
 0x58f   :  { %594 = vrot.lane.b32.xlu0 %v573_v8, %s2312_s6 }
 0x593   :  { %540 = vrot.lane.b32.xlu0 %v518_v49, %s2311_s8  ;;  %v503_v49 = vmul.f32 %v2717_v24, %v2678_v10 }
 0x597   :  { %596 = vrot.lane.b32.xlu0 %v574_v52, %s2312_s6  ;;  %v2785_v52 = vrot.slane %v479_v44, %v2555_v6 }
 0x59b   :  { %542 = vrot.lane.b32.xlu0 %v519_v2, %s2311_s8  ;;  %v954_v2 = vmul.f32 %v2613_v45, %v2639_v57 }
 0x59f   :  { %598 = vrot.lane.b32.xlu0 %v575_v11, %s2312_s6 }
 0x5a3   :  { %931 = vrot.lane.b32.xlu0 %v929_v12, %s2319_s22 }
 0x5a7   :  { %1087 = vrot.lane.b32.xlu0 %v1085_v14, %s2320_s23 }
 0x5ab   :  { %1143 = vrot.lane.b32.xlu0 %v1141_v15, %s2320_s23 }
 0x5af   :  { %966 = vrot.lane.b32.xlu0 %v950_v16, %s2311_s8  ;;  %v1010_v16 = vmul.f32 %v2631_v54, %v2639_v57 }
 0x5b3   :  { %1022 = vrot.lane.b32.xlu0 %v1006_v17, %s2312_s6 }
 0x5b7   :  { %968 = vrot.lane.b32.xlu0 %v951_v37, %s2311_s8 }
 0x5bb   :  { %1195 = vrot.lane.b32.xlu0 %v2705_v18, %s2311_s8 }
 0x5ca   :  { %v2721_v27 = vpop.permute.xlu1 %528 }
 0x5ce   :  { %v2709_v19 = vpop.permute.xlu0 %586  ;;  %v2727_v31 = vpop.permute.xlu1 %584 }
 0x5d2   :  { %v2711_v20 = vpop.permute.xlu0 %532  ;;  %v2731_v33 = vpop.permute.xlu1 %530 }
 0x5d6   :  { %v2737_v38 = vpop.permute.xlu1 %757 }
 0x5da   :  { %v2748_v50 = vpop.permute.xlu1 %588 }
 0x5dd   :  { %v2713_v21 = vpop.permute.xlu0 %773 }
 0x5de   :  { %v2760_v58 = vpop.permute.xlu1 %821 }
 0x5e1   :  { %v2715_v23 = vpop.permute.xlu0 %534 }
 0x5e2   :  { %v2776_v7 = vpop.permute.xlu1 %1071 }
 0x5e5   :  { %v2719_v25 = vpop.permute.xlu0 %590 }
 0x5e6   :  { %v2792_v14 = vpop.permute.xlu1 %1024 }
 0x5e9   :  { %v2723_v28 = vpop.permute.xlu0 %536 }
 0x5ea   :  { %v971_v17 = vpop.permute.xlu1 %970 }
 0x5ed   :  { %v2725_v29 = vpop.permute.xlu0 %592 }
 0x5f1   :  { %v2729_v32 = vpop.permute.xlu0 %538 }
 0x5f5   :  { %v2733_v35 = vpop.permute.xlu0 %633 }
 0x5f9   :  { %v2735_v36 = vpop.permute.xlu0 %649 }
 0x5fa   :  { %v652_v40 = vmul.f32 %v2735_v36, %v2569_v22  ;;  %v653_v53 = vmul.f32 %v2735_v36, %v2582_v30  ;;  %v654_v55 = vmul.f32 %v2735_v36, %v2588_v34 }
 0x5fc   :  { %668 = vrot.lane.b32.xlu0 %v652_v40, %s2311_s8 }
 0x5fd   :  { %v2742_v42 = vpop.permute.xlu0 %705 }
 0x5fe   :  { %v708_v43 = vmul.f32 %v2742_v42, %v2569_v22  ;;  %v709_v46 = vmul.f32 %v2742_v42, %v2582_v30  ;;  %v710_v4 = vmul.f32 %v2742_v42, %v2588_v34 }
 0x600   :  { %724 = vrot.lane.b32.xlu0 %v708_v43, %s2312_s6  ;;  %726 = vrot.lane.b32.xlu1 %v709_v46, %s2312_s6  ;;  %v655_v43 = vmul.f32 %v2735_v36, %v2621_v48 }
 0x601   :  { %v2752_v51 = vpop.permute.xlu0 %594 }
 0x604   :  { %670 = vrot.lane.b32.xlu0 %v653_v53, %s2311_s8  ;;  %672 = vrot.lane.b32.xlu1 %v654_v55, %s2311_s8  ;;  %v711_v55 = vmul.f32 %v2742_v42, %v2621_v48 }
 0x605   :  { %v541_v56 = vpop.permute.xlu0 %540 }
 0x606   :  { %v558_v63 = vadd.f32 %v541_v56, %v502_v59 }
 0x608   :  { %1026 = vrot.lane.b32.xlu0 %v1008_v60, %s2312_s6  ;;  %972 = vrot.lane.b32.xlu1 %v953_v61, %s2311_s8 }
 0x609   :  { %v597_v0 = vpop.permute.xlu0 %596 }
 0x60a   :  { %v2770_v3 = vadd.f32 %v597_v0, %v558_v63  ;;  %v656_v63 = vmul.f32 %v2735_v36, %v2639_v57 }
 0x60c   :  { %728 = vrot.lane.b32.xlu0 %v710_v4, %s2312_s6  ;;  %1028 = vrot.lane.b32.xlu1 %v1009_v5, %s2312_s6 }
 0x60d   :  { %v543_v8 = vpop.permute.xlu0 %542 }
 0x60e   :  { %v559_v11 = vadd.f32 %v543_v8, %v503_v49  ;;  %v712_v8 = vmul.f32 %v2742_v42, %v2639_v57 }
 0x610   :  { %1259 = vrot.lane.b32.xlu0 %v2785_v52, %s2313_s2  ;;  %974 = vrot.lane.b32.xlu1 %v954_v2, %s2311_s8 }
 0x611   :  { %v599_v12 = vpop.permute.xlu0 %598 }
 0x612   :  { %v2794_v15 = vadd.f32 %v599_v12, %v559_v11 }
 0x614   :  { %1030 = vrot.lane.b32.xlu1 %v1010_v16, %s2312_s6  ;;  %v657_v16 = vmul.f32 %v2735_v36, %v2652_v62 }
 0x615   :  { %v2799_v6 = vpop.permute.xlu0 %931 }
 0x616   :  { %v936_v44 = vmul.f32 %v2799_v6, %v2588_v34  ;;  %v934_v56 = vmul.f32 %v2799_v6, %v2569_v22  ;;  %v935_v49 = vmul.f32 %v2799_v6, %v2582_v30 }
 0x618   :  { %976 = vrot.lane.b32.xlu1 %v955_v41, %s2311_s8  ;;  %v2806_v40 = vadd.f32 %v971_v17, %v936_v44  ;;  %v713_v44 = vmul.f32 %v2742_v42, %v2652_v62 }
 0x619   :  { %v1088_v37 = vpop.permute.xlu0 %1087 }
 0x61a   :  { %v1092_v61 = vmul.f32 %v1088_v37, %v2588_v34  ;;  %v1093_v5 = vmul.f32 %v1088_v37, %v2621_v48  ;;  %v1094_v41 = vmul.f32 %v1088_v37, %v2639_v57 }
 0x61c   :  { %674 = vrot.lane.b32.xlu1 %v655_v43, %s2311_s8  ;;  %v658_v43 = vmul.f32 %v2735_v36, %v2670_v9 }
 0x61d   :  { %v1144_v46 = vpop.permute.xlu0 %1143 }
 0x61e   :  { %v1147_v53 = vmul.f32 %v1144_v46, %v2582_v30  ;;  %v1149_v12 = vmul.f32 %v1144_v46, %v2621_v48  ;;  %v1150_v17 = vmul.f32 %v1144_v46, %v2639_v57 }
 0x620   :  { %1164 = vrot.lane.b32.xlu0 %v1147_v53, %s2312_s6  ;;  %730 = vrot.lane.b32.xlu1 %v711_v55, %s2312_s6  ;;  %v1095_v53 = vmul.f32 %v1088_v37, %v2652_v62  ;;  %v714_v55 = vmul.f32 %v2742_v42, %v2670_v9 }
 0x621   :  { %v967_v59 = vpop.permute.xlu0 %966 }
 0x622   :  { %v990_v60 = vadd.f32 %v967_v59, %v934_v56  ;;  %v1151_v56 = vmul.f32 %v1144_v46, %v2652_v62  ;;  %v659_v59 = vmul.f32 %v2735_v36, %v2678_v10  ;;  %v1097_v36 = vmul.f32 %v1088_v37, %v2678_v10 }
 0x624   :  { %1110 = vrot.lane.b32.xlu0 %v1092_v61, %s2311_s8  ;;  %676 = vrot.lane.b32.xlu1 %v656_v63, %s2311_s8  ;;  %v715_v61 = vmul.f32 %v2742_v42, %v2678_v10  ;;  %v1152_v63 = vmul.f32 %v1144_v46, %v2670_v9  ;;  %v1153_v42 = vmul.f32 %v1144_v46, %v2678_v10 }
 0x625   :  { %v1023_v0 = vpop.permute.xlu0 %1022 }
 0x626   :  { %v2823_v4 = vadd.f32 %v1023_v0, %v990_v60  ;;  %v1096_v60 = vmul.f32 %v1088_v37, %v2670_v9  ;;  %v1090_v0 = vmul.f32 %v1088_v37, %v2569_v22 }
 0x628   :  { %1112 = vrot.lane.b32.xlu0 %v1093_v5, %s2311_s8  ;;  %732 = vrot.lane.b32.xlu1 %v712_v8, %s2312_s6  ;;  %v1146_v5 = vmul.f32 %v1144_v46, %v2569_v22  ;;  %v1091_v8 = vmul.f32 %v1088_v37, %v2582_v30  ;;  %v1012_v37 = vmul.f32 %v2631_v54, %v2670_v9 }
 0x629   :  { %v969_v2 = vpop.permute.xlu0 %968 }
 0x62a   :  { %v2832_v11 = vadd.f32 %v969_v2, %v935_v49  ;;  %v1148_v49 = vmul.f32 %v1144_v46, %v2588_v34  ;;  %v1011_v2 = vmul.f32 %v2631_v54, %v2652_v62  ;;  %v1013_v46 = vmul.f32 %v2631_v54, %v2678_v10 }
 0x62b   :  { %v636_v54 = vmul.f32 %v2733_v35, %v2569_v22 }
 0x62c   :  { %1168 = vrot.lane.b32.xlu0 %v1149_v12, %s2312_s6  ;;  %678 = vrot.lane.b32.xlu1 %v657_v16, %s2311_s8  ;;  %v956_v12 = vmul.f32 %v2613_v45, %v2670_v9 }
 0x62d   :  { %v2895_v16 = vpop.permute.xlu0 %1195 }
 0x630   :  { %1114 = vrot.lane.b32.xlu0 %v1094_v41, %s2311_s8  ;;  %734 = vrot.lane.b32.xlu1 %v713_v44, %s2312_s6  ;;  %v496_v41 = vmul.f32 %v2717_v24, %v2569_v22 }
 0x632   :  { %v552_v44 = vadd.f32 %v2721_v27, %v496_v41 }
 0x634   :  { %1170 = vrot.lane.b32.xlu0 %v1150_v17, %s2312_s6  ;;  %680 = vrot.lane.b32.xlu1 %v658_v43, %s2311_s8  ;;  %v2900_v17 = vpop.permute.xlu1 %1211 }
 0x638   :  { %1116 = vrot.lane.b32.xlu0 %v1095_v53, %s2311_s8  ;;  %736 = vrot.lane.b32.xlu1 %v714_v55, %s2312_s6  ;;  %v608_v53 = vadd.f32 %v2727_v31, %v552_v44  ;;  %v637_v31 = vmul.f32 %v2733_v35, %v2582_v30  ;;  %v937_v44 = vmul.f32 %v2799_v6, %v2621_v48 }
 0x63c   :  { %1172 = vrot.lane.b32.xlu0 %v1151_v56, %s2312_s6  ;;  %682 = vrot.lane.b32.xlu1 %v659_v59, %s2311_s8 }
 0x640   :  { %1118 = vrot.lane.b32.xlu0 %v1096_v60, %s2311_s8  ;;  %738 = vrot.lane.b32.xlu1 %v715_v61, %s2312_s6  ;;  %v2909_v61 = vadd.f32 %v2602_v39, %v608_v53  ;;  %v638_v53 = vmul.f32 %v2733_v35, %v2588_v34 }
 0x644   :  { %1174 = vrot.lane.b32.xlu0 %v1152_v63, %s2312_s6  ;;  %1106 = vrot.lane.b32.xlu1 %v1090_v0, %s2311_s8 }
 0x648   :  { %1120 = vrot.lane.b32.xlu0 %v1097_v36, %s2311_s8  ;;  %1162 = vrot.lane.b32.xlu1 %v1146_v5, %s2312_s6  ;;  %v498_v36 = vmul.f32 %v2717_v24, %v2588_v34 }
 0x64c   :  { %1176 = vrot.lane.b32.xlu0 %v1153_v42, %s2312_s6  ;;  %1108 = vrot.lane.b32.xlu1 %v1091_v8, %s2311_s8  ;;  %v796_v8 = vmul.f32 %v2909_v61, %v2909_v61 }
 0x650   :  { %864 = vrot.lane.b32.xlu0 %v2619_v47, %s2311_s8  ;;  %1166 = vrot.lane.b32.xlu1 %v1148_v49, %s2312_s6  ;;  %v957_v47 = vmul.f32 %v2613_v45, %v2678_v10  ;;  %v497_v45 = vmul.f32 %v2717_v24, %v2582_v30 }
 0x652   :  { %v553_v55 = vadd.f32 %v2731_v33, %v497_v45  ;;  %v1405_v33 = vld [vmem:[#allocation16] sm:$0xff] }
 0x654   :  { %1032 = vrot.lane.b32.xlu1 %v1011_v2, %s2312_s6  ;;  %v609_v63 = vadd.f32 %v2709_v19, %v553_v55  ;;  %v554_v19 = vadd.f32 %v2711_v20, %v498_v36 }
 0x658   :  { %978 = vrot.lane.b32.xlu1 %v956_v12, %s2311_s8 }
 0x65c   :  { %1034 = vrot.lane.b32.xlu1 %v1012_v37, %s2312_s6  ;;  %v1407_v37 = vcombine.high %v1405_v33, %v1405_v33 }
 0x65e   :  { %1794 = vmatprep.subr.msk.mxu0 %vm1457_vm1, %v1407_v37 }
 0x65f   :  { %1795 = vmatpush1.msk.msra.mxu0 %vm1457_vm1, %v1405_v33 }
 0x660   :  { %980 = vrot.lane.b32.xlu1 %v957_v47, %s2311_s8  ;;  %v2922_v47 = vadd.f32 %v2602_v39, %v609_v63 }
 0x664   :  { %1036 = vrot.lane.b32.xlu1 %v1013_v46, %s2312_s6 }
 0x66e   :  { %v669_v43 = vpop.permute.xlu0 %668 }
 0x66f   :  { %v692_v56 = vadd.f32 %v669_v43, %v636_v54  ;;  %v610_v43 = vadd.f32 %v2748_v50, %v554_v19 }
 0x671   :  { %v2940_v36 = vadd.f32 %v2602_v39, %v610_v43 }
 0x672   :  { %v725_v59 = vpop.permute.xlu0 %724  ;;  %v727_v60 = vpop.permute.xlu1 %726 }
 0x673   :  { %v748_v27 = vadd.f32 %v725_v59, %v692_v56 }
 0x675   :  { %v760_v0 = vadd.f32 %v2737_v38, %v748_v27 }
 0x676   :  { %v671_v5 = vpop.permute.xlu0 %670  ;;  %v673_v42 = vpop.permute.xlu1 %672 }
 0x677   :  { %v784_v49 = vmul.f32 %v2713_v21, %v760_v0  ;;  %v804_v2 = vmul.f32 %v760_v0, %v760_v0  ;;  %v693_v12 = vadd.f32 %v671_v5, %v637_v31  ;;  %v694_v63 = vadd.f32 %v673_v42, %v638_v53 }
 0x679   :  { %v812_v46 = vadd.f32 %v804_v2, %v796_v8  ;;  %v749_v41 = vadd.f32 %v727_v60, %v693_v12  ;;  %840 = vrot.lane.b32.xlu1 %v784_v49, %s2314_s15  ;;  %v797_v60 = vmul.f32 %v2922_v47, %v2922_v47  ;;  %v938_v49 = vmul.f32 %v2799_v6, %v2639_v57 }
 0x67a   :  { %v1027_v45 = vpop.permute.xlu0 %1026  ;;  %v973_v54 = vpop.permute.xlu1 %972  ;;  %v798_v12 = vmul.f32 %v2940_v36, %v2940_v36 }
 0x67b   :  { %v761_v20 = vadd.f32 %v2737_v38, %v749_v41  ;;  %v2932_v55 = vadd.f32 %v1027_v45, %v2806_v40  ;;  %v993_v56 = vadd.f32 %v973_v54, %v937_v44  ;;  %v824_v59 = vmul.f32 %v2760_v58, %v812_v46 }
 0x67c   :  { %v939_v45 = vmul.f32 %v2799_v6, %v2652_v62 }
 0x67d   :  { %v785_v50 = vmul.f32 %v2713_v21, %v761_v20  ;;  %v805_v27 = vmul.f32 %v761_v20, %v761_v20  ;;  %875 = vrot.lane.b32.xlu1 %v824_v59, %s2318_s5  ;;  %v499_v20 = vmul.f32 %v2717_v24, %v2621_v48 }
 0x67e   :  { %v729_v0 = vpop.permute.xlu0 %728  ;;  %v1029_v31 = vpop.permute.xlu1 %1028 }
 0x67f   :  { %v813_v40 = vadd.f32 %v805_v27, %v797_v60  ;;  %v750_v5 = vadd.f32 %v729_v0, %v694_v63  ;;  %842 = vrot.lane.b32.xlu0 %v785_v50, %s2314_s15  ;;  %v1049_v8 = vadd.f32 %v1029_v31, %v993_v56  ;;  %v555_v59 = vadd.f32 %v2715_v23, %v499_v20 }
 0x680   :  { %v639_v63 = vmul.f32 %v2733_v35, %v2621_v48  ;;  %v500_v31 = vmul.f32 %v2717_v24, %v2639_v57  ;;  %v1077_v20 = vmul.f32 %v2776_v7, %v2621_v48 }
 0x681   :  { %v762_v33 = vadd.f32 %v2737_v38, %v750_v5  ;;  %v825_v2 = vmul.f32 %v2760_v58, %v813_v40  ;;  %v611_v27 = vadd.f32 %v2719_v25, %v555_v59 }
 0x682   :  { %v975_v42 = vpop.permute.xlu1 %974  ;;  %v2963_v60 = vpop.permute.xlu0 %1259  ;;  %v556_v23 = vadd.f32 %v2723_v28, %v500_v31 }
 0x683   :  { %v786_v19 = vmul.f32 %v2713_v21, %v762_v33  ;;  %v806_v37 = vmul.f32 %v762_v33, %v762_v33  ;;  %v994_v46 = vadd.f32 %v975_v42, %v938_v49  ;;  %877 = vrot.lane.b32.xlu1 %v825_v2, %s2318_s5  ;;  %v2973_v33 = vadd.f32 %v2602_v39, %v611_v27 }
 0x684   :  { %v612_v25 = vadd.f32 %v2725_v29, %v556_v23  ;;  %v501_v29 = vmul.f32 %v2717_v24, %v2652_v62  ;;  %v3003_v23 = vadd.f32 %v2705_v18, %v1049_v8 }
 0x685   :  { %v814_v41 = vadd.f32 %v806_v37, %v798_v12  ;;  %844 = vrot.lane.b32.xlu0 %v786_v19, %s2314_s15  ;;  %v799_v19 = vmul.f32 %v2973_v33, %v2973_v33 }
 0x686   :  { %v1031_v44 = vpop.permute.xlu1 %1030  ;;  %v2987_v28 = vadd.f32 %v2602_v39, %v612_v25  ;;  %v557_v27 = vadd.f32 %v2729_v32, %v501_v29  ;;  %v1237_v8 = vmul.f32 %v3003_v23, %v3003_v23 }
 0x687   :  { %v2952_v43 = vadd.f32 %v1031_v44, %v994_v46  ;;  %v826_v53 = vmul.f32 %v2760_v58, %v814_v41  ;;  %v640_v41 = vmul.f32 %v2733_v35, %v2639_v57 }
 0x688   :  { %v800_v31 = vmul.f32 %v2987_v28, %v2987_v28  ;;  %v613_v24 = vadd.f32 %v2752_v51, %v557_v27 }
 0x689   :  { %879 = vrot.lane.b32.xlu1 %v826_v53, %s2318_s5 }
 0x68a   :  { %v977_v54 = vpop.permute.xlu1 %976  ;;  %v3011_v51 = vadd.f32 %v2602_v39, %v613_v24 }
 0x68b   :  { %v2960_v56 = vadd.f32 %v977_v54, %v939_v45 }
 0x68e   :  { %v675_v50 = vpop.permute.xlu1 %674 }
 0x68f   :  { %v695_v0 = vadd.f32 %v675_v50, %v639_v63 }
 0x692   :  { %v2970_v40 = vpop.permute.xlu0 %1164  ;;  %v731_v5 = vpop.permute.xlu1 %730 }
 0x693   :  { %v751_v49 = vadd.f32 %v731_v5, %v695_v0 }
 0x695   :  { %v763_v2 = vadd.f32 %v2737_v38, %v751_v49  ;;  %v641_v49 = vmul.f32 %v2733_v35, %v2652_v62 }
 0x696   :  { %v2978_v42 = vpop.permute.xlu0 %1110  ;;  %v677_v12 = vpop.permute.xlu1 %676 }
 0x697   :  { %v787_v37 = vmul.f32 %v2713_v21, %v763_v2  ;;  %v807_v46 = vmul.f32 %v763_v2, %v763_v2  ;;  %v696_v53 = vadd.f32 %v677_v12, %v640_v41 }
 0x699   :  { %v815_v44 = vadd.f32 %v807_v46, %v799_v19  ;;  %846 = vrot.lane.b32.xlu0 %v787_v37, %s2314_s15 }
 0x69a   :  { %v1113_v45 = vpop.permute.xlu0 %1112  ;;  %v733_v54 = vpop.permute.xlu1 %732 }
 0x69b   :  { %v752_v59 = vadd.f32 %v733_v54, %v696_v53  ;;  %v827_v50 = vmul.f32 %v2760_v58, %v815_v44  ;;  %v1133_v63 = vadd.f32 %v1113_v45, %v1077_v20  ;;  %v1078_v53 = vmul.f32 %v2776_v7, %v2639_v57 }
 0x69c   :  { %v3030_v57 = vadd.f32 %v2705_v18, %v2952_v43 }
 0x69d   :  { %v764_v0 = vadd.f32 %v2737_v38, %v752_v59  ;;  %881 = vrot.lane.b32.xlu1 %v827_v50, %s2318_s5  ;;  %v801_v50 = vmul.f32 %v3011_v51, %v3011_v51 }
 0x69e   :  { %v1169_v5 = vpop.permute.xlu0 %1168  ;;  %v679_v48 = vpop.permute.xlu1 %678  ;;  %v1238_v43 = vmul.f32 %v3030_v57, %v3030_v57 }
 0x69f   :  { %v788_v32 = vmul.f32 %v2713_v21, %v764_v0  ;;  %v808_v2 = vmul.f32 %v764_v0, %v764_v0  ;;  %v1189_v25 = vadd.f32 %v1169_v5, %v1133_v63  ;;  %v697_v37 = vadd.f32 %v679_v48, %v641_v49 }
 0x6a0   :  { %v642_v63 = vmul.f32 %v2733_v35, %v2670_v9 }
 0x6a1   :  { %v816_v12 = vadd.f32 %v808_v2, %v800_v31  ;;  %v3007_v19 = vadd.f32 %v2895_v16, %v1189_v25  ;;  %848 = vrot.lane.b32.xlu0 %v788_v32, %s2314_s15  ;;  %v3039_v25 = vadd.f32 %v2602_v39, %v2770_v3 }
 0x6a2   :  { %v1115_v46 = vpop.permute.xlu0 %1114  ;;  %v735_v41 = vpop.permute.xlu1 %734 }
 0x6a3   :  { %v1245_v44 = vmul.f32 %v3007_v19, %v3007_v19  ;;  %v753_v29 = vadd.f32 %v735_v41, %v697_v37  ;;  %v828_v45 = vmul.f32 %v2760_v58, %v816_v12  ;;  %v1134_v20 = vadd.f32 %v1115_v46, %v1078_v53 }
 0x6a4   :  { %v802_v3 = vmul.f32 %v3039_v25, %v3039_v25 }
 0x6a5   :  { %v3020_v54 = vadd.f32 %v1245_v44, %v1237_v8  ;;  %v765_v59 = vadd.f32 %v2737_v38, %v753_v29  ;;  %883 = vrot.lane.b32.xlu1 %v828_v45, %s2318_s5  ;;  %v643_v45 = vmul.f32 %v2733_v35, %v2678_v10 }
 0x6a6   :  { %v1171_v27 = vpop.permute.xlu0 %1170  ;;  %v681_v0 = vpop.permute.xlu1 %680 }
 0x6a7   :  { %v789_v31 = vmul.f32 %v2713_v21, %v765_v59  ;;  %v809_v24 = vmul.f32 %v765_v59, %v765_v59  ;;  %v1190_v5 = vadd.f32 %v1171_v27, %v1134_v20  ;;  %v698_v32 = vadd.f32 %v681_v0, %v642_v63 }
 0x6a8   :  { %v3058_v63 = vadd.f32 %v2602_v39, %v2794_v15 }
 0x6a9   :  { %v817_v49 = vadd.f32 %v809_v24, %v801_v50  ;;  %v3034_v48 = vadd.f32 %v2895_v16, %v1190_v5  ;;  %850 = vrot.lane.b32.xlu0 %v789_v31, %s2314_s15 }
 0x6aa   :  { %v737_v2 = vpop.permute.xlu1 %736  ;;  %v1117_v50 = vpop.permute.xlu0 %1116  ;;  %v803_v35 = vmul.f32 %v3058_v63, %v3058_v63 }
 0x6ab   :  { %v1246_v12 = vmul.f32 %v3034_v48, %v3034_v48  ;;  %v754_v37 = vadd.f32 %v737_v2, %v698_v32  ;;  %v829_v46 = vmul.f32 %v2760_v58, %v817_v49  ;;  %v1074_v2 = vmul.f32 %v2776_v7, %v2569_v22 }
 0x6ac   :  { %v1075_v22 = vmul.f32 %v2776_v7, %v2582_v30 }
 0x6ad   :  { %v3046_v41 = vadd.f32 %v1246_v12, %v1238_v43  ;;  %v766_v8 = vadd.f32 %v2737_v38, %v754_v37  ;;  %885 = vrot.lane.b32.xlu1 %v829_v46, %s2318_s5  ;;  %v1047_v46 = vadd.f32 %v2792_v14, %v2832_v11 }
 0x6ae   :  { %v683_v44 = vpop.permute.xlu1 %682  ;;  %v1173_v43 = vpop.permute.xlu0 %1172 }
 0x6af   :  { %v790_v53 = vmul.f32 %v2713_v21, %v766_v8  ;;  %v810_v29 = vmul.f32 %v766_v8, %v766_v8  ;;  %v699_v59 = vadd.f32 %v683_v44, %v643_v45 }
 0x6b1   :  { %v818_v20 = vadd.f32 %v810_v29, %v802_v3  ;;  %852 = vrot.lane.b32.xlu0 %v790_v53, %s2314_s15  ;;  %v1076_v3 = vmul.f32 %v2776_v7, %v2588_v34  ;;  %v1079_v53 = vmul.f32 %v2776_v7, %v2652_v62 }
 0x6b2   :  { %v739_v27 = vpop.permute.xlu1 %738  ;;  %v1119_v29 = vpop.permute.xlu0 %1118 }
 0x6b3   :  { %v755_v0 = vadd.f32 %v739_v27, %v699_v59  ;;  %v830_v31 = vmul.f32 %v2760_v58, %v818_v20  ;;  %v3088_v20 = vadd.f32 %v2705_v18, %v1047_v46  ;;  %v1132_v30 = vadd.f32 %v2978_v42, %v1076_v3 }
 0x6b4   :  { %v1135_v34 = vadd.f32 %v1117_v50, %v1079_v53  ;;  %v3095_v27 = vadd.f32 %v2705_v18, %v2932_v55 }
 0x6b5   :  { %v767_v24 = vadd.f32 %v2737_v38, %v755_v0  ;;  %887 = vrot.lane.b32.xlu1 %v830_v31, %s2318_s5  ;;  %v3071_v38 = vadd.f32 %v2705_v18, %v2823_v4  ;;  %v358_v31 = vsub.f32 0.0, %v2503_v1  ;;  %v1080_v1 = vmul.f32 %v2776_v7, %v2670_v9 }
 0x6b6   :  { %v1107_v5 = vpop.permute.xlu1 %1106  ;;  %v1175_v50 = vpop.permute.xlu0 %1174 }
 0x6b7   :  { %v791_v49 = vmul.f32 %v2713_v21, %v767_v24  ;;  %v811_v32 = vmul.f32 %v767_v24, %v767_v24  ;;  %v1130_v15 = vadd.f32 %v1107_v5, %v1074_v2  ;;  %v1234_v14 = vmul.f32 %v3071_v38, %v3071_v38 }
 0x6b8   :  { %v1191_v24 = vadd.f32 %v1173_v43, %v1135_v34  ;;  %v359_v43 = vmul.f32 1.442695, %v358_v31  ;;  %v1136_v46 = vadd.f32 %v1119_v29, %v1080_v1  ;;  %v1225_v29 = vmul.f32 %v2900_v17, %v3007_v19 }
 0x6b9   :  { %v819_v39 = vadd.f32 %v811_v32, %v803_v35  ;;  %854 = vrot.lane.b32.xlu0 %v791_v49, %s2314_s15 }
 0x6ba   :  { %v1163_v12 = vpop.permute.xlu1 %1162  ;;  %v1121_v53 = vpop.permute.xlu0 %1120  ;;  %1996 = vpow2.f32 %v359_v43 }
 0x6bb   :  { %v1186_v37 = vadd.f32 %v1163_v12, %v1130_v15  ;;  %v831_v8 = vmul.f32 %v2760_v58, %v819_v39  ;;  %v1203_v39 = vadd.f32 %v2895_v16, %v1191_v24  ;;  %v1226_v24 = vmul.f32 %v2900_v17, %v3034_v48 }
 0x6bd   :  { %v1198_v44 = vadd.f32 %v2895_v16, %v1186_v37  ;;  %889 = vrot.lane.b32.xlu1 %v831_v8, %s2318_s5 }
 0x6be   :  { %v1109_v4 = vpop.permute.xlu1 %1108  ;;  %v1177_v31 = vpop.permute.xlu0 %1176 }
 0x6bf   :  { %v1222_v58 = vmul.f32 %v2900_v17, %v1198_v44  ;;  %v1242_v11 = vmul.f32 %v1198_v44, %v1198_v44  ;;  %v1131_v45 = vadd.f32 %v1109_v4, %v1075_v22  ;;  %v940_v4 = vmul.f32 %v2799_v6, %v2670_v9 }
 0x6c1   :  { %v1250_v59 = vadd.f32 %v1242_v11, %v1234_v14  ;;  %v1187_v62 = vadd.f32 %v2970_v40, %v1131_v45  ;;  %1278 = vrot.lane.b32.xlu0 %v1222_v58, %s2314_s15  ;;  %1302 = vrot.lane.b32.xlu1 %v2785_v52, %s2311_s8  ;;  %v1235_v40 = vmul.f32 %v3088_v20, %v3088_v20 }
 0x6c2   :  { %v1167_v0 = vpop.permute.xlu1 %1166  ;;  %v1236_v52 = vmul.f32 %v3095_v27, %v3095_v27  ;;  %v1247_v58 = vmul.f32 %v1203_v39, %v1203_v39  ;;  %v1192_v11 = vadd.f32 %v1175_v50, %v1136_v46  ;;  %v941_v50 = vmul.f32 %v2799_v6, %v2678_v10 }
 0x6c3   :  { %v1199_v5 = vadd.f32 %v2895_v16, %v1187_v62  ;;  %v1188_v42 = vadd.f32 %v1167_v0, %v1132_v30  ;;  %v1262_v35 = vmul.f32 %v2963_v60, %v1250_v59  ;;  %v1081_v62 = vmul.f32 %v2776_v7, %v2678_v10 }
 0x6c4   :  { %v1204_v9 = vadd.f32 %v2895_v16, %v1192_v11  ;;  %v1997_v48 = vpop.eup %1996 }
 0x6c5   :  { %v1223_v49 = vmul.f32 %v2900_v17, %v1199_v5  ;;  %v1243_v55 = vmul.f32 %v1199_v5, %v1199_v5  ;;  %v1200_v32 = vadd.f32 %v2895_v16, %v1188_v42  ;;  %1313 = vrot.lane.b32.xlu0 %v1262_v35, %s2318_s5  ;;  %v1137_v19 = vadd.f32 %v1121_v53, %v1081_v62 }
 0x6c6   :  { %v1033_v2 = vpop.permute.xlu1 %1032  ;;  %v1265_v42 = vmul.f32 %v2963_v60, %v3020_v54  ;;  %v1248_v35 = vmul.f32 %v1204_v9, %v1204_v9  ;;  %v1266_v54 = vmul.f32 %v2963_v60, %v3046_v41  ;;  %v1228_v43 = vmul.f32 %v2900_v17, %v1204_v9 }
 0x6c7   :  { %v1251_v15 = vadd.f32 %v1243_v55, %v1235_v40  ;;  %v1244_v12 = vmul.f32 %v1200_v32, %v1200_v32  ;;  %v1051_v37 = vadd.f32 %v1033_v2, %v2960_v56  ;;  %1280 = vrot.lane.b32.xlu1 %v1223_v49, %s2314_s15  ;;  %v1224_v8 = vmul.f32 %v2900_v17, %v1200_v32 }
 0x6c8   :  { %v1193_v40 = vadd.f32 %v1177_v31, %v1137_v19  ;;  %v1227_v55 = vmul.f32 %v2900_v17, %v1203_v39  ;;  %v361_v2 = vadd.f32 1.0, %v1997_v48 }
 0x6c9   :  { %v1252_v44 = vadd.f32 %v1244_v12, %v1236_v52  ;;  %v3116_v22 = vadd.f32 %v2705_v18, %v1051_v37  ;;  %v1263_v3 = vmul.f32 %v2963_v60, %v1251_v15 }
 0x6ca   :  { %v979_v14 = vpop.permute.xlu1 %978  ;;  %v1205_v10 = vadd.f32 %v2895_v16, %v1193_v40  ;;  %1998 = vrcp.f32 %v361_v2  ;;  %v780_v40 = vmul.f32 %v2713_v21, %v2987_v28 }
 0x6cb   :  { %v1239_v56 = vmul.f32 %v3116_v22, %v3116_v22  ;;  %1315 = vrot.lane.b32.xlu0 %v1263_v3, %s2318_s5  ;;  %1282 = vrot.lane.b32.xlu1 %v1224_v8, %s2314_s15  ;;  %v996_v30 = vadd.f32 %v979_v14, %v940_v4  ;;  %v1264_v34 = vmul.f32 %v2963_v60, %v1252_v44  ;;  %v3172_v4 = vpop.permute.xlu0 %864 }
 0x6cc   :  { %v1249_v12 = vmul.f32 %v1205_v10, %v1205_v10  ;;  %v1229_v16 = vmul.f32 %v2900_v17, %v1205_v10  ;;  %v776_v44 = vmul.f32 %v2713_v21, %v2909_v61 }
 0x6cd   :  { %v1255_v45 = vadd.f32 %v1247_v58, %v1239_v56  ;;  %v777_v58 = vmul.f32 %v2713_v21, %v2922_v47 }
 0x6ce   :  { %v1035_v59 = vpop.permute.xlu1 %1034 }
 0x6cf   :  { %v1052_v0 = vadd.f32 %v1035_v59, %v996_v30  ;;  %1317 = vrot.lane.b32.xlu0 %v1264_v34, %s2318_s5  ;;  %1284 = vrot.lane.b32.xlu1 %v1225_v29, %s2314_s15  ;;  %v1267_v39 = vmul.f32 %v2963_v60, %v1255_v45  ;;  %v778_v30 = vmul.f32 %v2713_v21, %v2940_v36 }
 0x6d1   :  { %v3136_v5 = vadd.f32 %v2705_v18, %v1052_v0 }
 0x6d2   :  { %v981_v7 = vpop.permute.xlu1 %980 }
 0x6d3   :  { %v1240_v49 = vmul.f32 %v3136_v5, %v3136_v5  ;;  %1319 = vrot.lane.b32.xlu0 %v1265_v42, %s2318_s5  ;;  %1286 = vrot.lane.b32.xlu1 %v1226_v24, %s2314_s15  ;;  %v997_v52 = vadd.f32 %v981_v7, %v941_v50  ;;  %v779_v24 = vmul.f32 %v2713_v21, %v2973_v33 }
 0x6d4   :  { %v1999_v8 = vpop.eup %1998 }
 0x6d5   :  { %v1256_v32 = vadd.f32 %v1248_v35, %v1240_v49 }
 0x6d6   :  { %v1037_v1 = vpop.permute.xlu1 %1036 }
 0x6d7   :  { %v1053_v6 = vadd.f32 %v1037_v1, %v997_v52  ;;  %1321 = vrot.lane.b32.xlu0 %v1266_v54, %s2318_s5  ;;  %1288 = vrot.lane.b32.xlu1 %v1227_v55, %s2314_s15  ;;  %v1268_v46 = vmul.f32 %v2963_v60, %v1256_v32  ;;  %v781_v54 = vmul.f32 %v2713_v21, %v3011_v51 }
 0x6d9   :  { %v3154_v15 = vadd.f32 %v2705_v18, %v1053_v6 }
 0x6db   :  { %v1241_v41 = vmul.f32 %v3154_v15, %v3154_v15  ;;  %1323 = vrot.lane.b32.xlu0 %v1267_v39, %s2318_s5  ;;  %1290 = vrot.lane.b32.xlu1 %v1228_v43, %s2314_s15  ;;  %v782_v39 = vmul.f32 %v2713_v21, %v3039_v25 }
 0x6dd   :  { %v1257_v37 = vadd.f32 %v1249_v12, %v1241_v41 }
 0x6df   :  { %1325 = vrot.lane.b32.xlu0 %v1268_v46, %s2318_s5  ;;  %1292 = vrot.lane.b32.xlu1 %v1229_v16, %s2314_s15  ;;  %v1269_v18 = vmul.f32 %v2963_v60, %v1257_v37 }
 0x6e3   :  { %1327 = vrot.lane.b32.xlu0 %v1269_v18, %s2318_s5  ;;  %1379 = vrot.lane.b32.xlu1 %v2573_v26, %s2313_s2  ;;  %v783_v18 = vmul.f32 %v2713_v21, %v3058_v63  ;;  %v1214_v21 = vmul.f32 %v2900_v17, %v3071_v38 }
 0x6e7   :  { %1383 = vrot.lane.b32.xlu0 %v1999_v8, %s2321_s26 }
 0x6eb   :  { %v841_v3 = vpop.permute.xlu1 %840 }
 0x6ec   :  { %v900_v53 = vsel %vm899_vm2, %v776_v44, %v841_v3 }
 0x6ed   :  { %v909_v14 = vsel %vm908_vm3, %v900_v53, %v3172_v4 }
 0x6ef   :  { %v876_v60 = vpop.permute.xlu1 %875 }
 0x6f0   :  { %v918_v26 = vsel %vm917_vm4, %v909_v14, %v876_v60 }
 0x6f1   :  { %1362 = vst.msk [vmem:[#allocation2] sm:$0xff] %vm1361_vm5, %v918_v26  ;;  %v843_v61 = vpop.permute.xlu0 %842 }
 0x6f2   :  { %v901_v11 = vsel %vm899_vm2, %v777_v58, %v843_v61  ;;  %v1215_v61 = vmul.f32 %v2900_v17, %v3088_v20 }
 0x6f3   :  { %v910_v56 = vsel %vm908_vm3, %v901_v11, %v3172_v4 }
 0x6f5   :  { %v878_v29 = vpop.permute.xlu1 %877 }
 0x6f6   :  { %v919_v45 = vsel %vm917_vm4, %v910_v56, %v878_v29 }
 0x6f7   :  { %1363 = vst.msk [vmem:[#allocation2 + $0x8] sm:$0xff] %vm1361_vm5, %v919_v45  ;;  %v845_v34 = vpop.permute.xlu0 %844  ;;  %v1216_v45 = vmul.f32 %v2900_v17, %v3095_v27 }
 0x6f8   :  { %v902_v59 = vsel %vm899_vm2, %v778_v30, %v845_v34  ;;  %v1389_v47 = vld [vmem:[#allocation2] sm:$0xff] }
 0x6f9   :  { %1796 = vmatmul.mubr.msk.f32.vlgmr.msra.gmra.mrb[2].mxu0 %vm1361_vm5, %v1389_v47  ;;  %v911_v9 = vsel %vm908_vm3, %v902_v59, %v3172_v4 }
 0x6fa   :  { %1532 = vmatprep.mubr.f32.mxu0 %v2310_v13 }
 0x6fb   :  { %v880_v62 = vpop.permute.xlu1 %879 }
 0x6fc   :  { %v920_v0 = vsel %vm917_vm4, %v911_v9, %v880_v62  ;;  %v1217_v9 = vmul.f32 %v2900_v17, %v3003_v23 }
 0x6fd   :  { %1364 = vst.msk [vmem:[#allocation2 + $0x10] sm:$0xff] %vm1361_vm5, %v920_v0 }
 0x6fe   :  { %v1390_v31 = vld [vmem:[#allocation2 + $0x8] sm:$0xff] }
 0x6ff   :  { %1797 = vmatmul.mubr.msk.f32.gmra.mrb[4].mxu0 %vm1361_vm5, %v1390_v31 }
 0x700   :  { %1538 = vmatprep.mubr.f32.mxu0 %v2310_v13 }
 0x704   :  { %v1391_v36 = vld [vmem:[#allocation2 + $0x10] sm:$0xff] }
 0x705   :  { %1798 = vmatmul.mubr.msk.f32.gmra.mrb[6].mxu0 %vm1361_vm5, %v1391_v36 }
 0x706   :  { %1544 = vmatprep.mubr.f32.mxu0 %v2310_v13 }
 0x70b   :  { %v847_v19 = vpop.permute.xlu0 %846 }
 0x70c   :  { %v903_v42 = vsel %vm899_vm2, %v779_v24, %v847_v19  ;;  %v1218_v19 = vmul.f32 %v2900_v17, %v3030_v57 }
 0x70d   :  { %v912_v50 = vsel %vm908_vm3, %v903_v42, %v3172_v4 }
 0x70f   :  { %v882_v7 = vpop.permute.xlu1 %881 }
 0x710   :  { %v921_v35 = vsel %vm917_vm4, %v912_v50, %v882_v7 }
 0x711   :  { %1365 = vst.msk [vmem:[#allocation2 + $0x18] sm:$0xff] %vm1361_vm5, %v921_v35 }
 0x713   :  { %v849_v49 = vpop.permute.xlu0 %848 }
 0x714   :  { %v904_v48 = vsel %vm899_vm2, %v780_v40, %v849_v49  ;;  %v1219_v49 = vmul.f32 %v2900_v17, %v3116_v22 }
 0x715   :  { %v913_v33 = vsel %vm908_vm3, %v904_v48, %v3172_v4 }
 0x717   :  { %v884_v55 = vpop.permute.xlu1 %883 }
 0x718   :  { %v1392_v32 = vld [vmem:[#allocation2 + $0x18] sm:$0xff]  ;;  %v922_v52 = vsel %vm917_vm4, %v913_v33, %v884_v55 }
 0x719   :  { %1799 = vmatmul.mubr.msk.f32.gmra.mrb[8].mxu0 %vm1361_vm5, %v1392_v32  ;;  %1366 = vst.msk [vmem:[#allocation2 + $0x20] sm:$0xff] %vm1361_vm5, %v922_v52 }
 0x71a   :  { %1550 = vmatprep.mubr.f32.mxu0 %v2310_v13 }
 0x71b   :  { %v851_v28 = vpop.permute.xlu0 %850 }
 0x71c   :  { %v905_v1 = vsel %vm899_vm2, %v781_v54, %v851_v28  ;;  %v1220_v54 = vmul.f32 %v2900_v17, %v3136_v5 }
 0x71d   :  { %v914_v10 = vsel %vm908_vm3, %v905_v1, %v3172_v4 }
 0x71f   :  { %v886_v6 = vpop.permute.xlu1 %885 }
 0x720   :  { %v923_v2 = vsel %vm917_vm4, %v914_v10, %v886_v6  ;;  %v1393_v43 = vld [vmem:[#allocation2 + $0x20] sm:$0xff] }
 0x721   :  { %1367 = vst.msk [vmem:[#allocation2 + $0x28] sm:$0xff] %vm1361_vm5, %v923_v2  ;;  %1800 = vmatmul.mubr.msk.f32.gmra.mrb[10].mxu0 %vm1361_vm5, %v1393_v43  ;;  %v1221_v43 = vmul.f32 %v2900_v17, %v3154_v15 }
 0x722   :  { %1556 = vmatprep.mubr.f32.mxu0 %v2310_v13 }
 0x723   :  { %v853_v12 = vpop.permute.xlu0 %852 }
 0x724   :  { %v906_v51 = vsel %vm899_vm2, %v782_v39, %v853_v12 }
 0x725   :  { %v915_v41 = vsel %vm908_vm3, %v906_v51, %v3172_v4 }
 0x727   :  { %v888_v16 = vpop.permute.xlu1 %887 }
 0x728   :  { %v924_v37 = vsel %vm917_vm4, %v915_v41, %v888_v16  ;;  %v1394_v46 = vld [vmem:[#allocation2 + $0x28] sm:$0xff] }
 0x729   :  { %1368 = vst.msk [vmem:[#allocation2 + $0x30] sm:$0xff] %vm1361_vm5, %v924_v37  ;;  %1801 = vmatmul.mubr.msk.f32.gmra.mrb[12].mxu0 %vm1361_vm5, %v1394_v46 }
 0x72a   :  { %1562 = vmatprep.mubr.f32.mxu0 %v2310_v13 }
 0x72b   :  { %v855_v25 = vpop.permute.xlu0 %854 }
 0x72c   :  { %v907_v8 = vsel %vm899_vm2, %v783_v18, %v855_v25 }
 0x72d   :  { %v916_v44 = vsel %vm908_vm3, %v907_v8, %v3172_v4 }
 0x72f   :  { %v890_v3 = vpop.permute.xlu1 %889 }
 0x730   :  { %v925_v53 = vsel %vm917_vm4, %v916_v44, %v890_v3  ;;  %v1395_v60 = vld [vmem:[#allocation2 + $0x30] sm:$0xff] }
 0x731   :  { %1369 = vst.msk [vmem:[#allocation2 + $0x38] sm:$0xff] %vm1361_vm5, %v925_v53  ;;  %1802 = vmatmul.mubr.msk.f32.gmra.mrb[14].mxu0 %vm1361_vm5, %v1395_v60  ;;  %v2322_v60 = vmov 0  }
 0x732   :  { %1568 = vmatprep.mubr.f32.mxu0 %v2310_v13  ;;  %1736 = vmatprep.mubr.bf16.mxu1 %v2322_v60 }
 0x733   :  { %v1279_v63 = vpop.permute.xlu0 %1278  ;;  %v3244_v26 = vpop.permute.xlu1 %1302 }
 0x734   :  { %v1337_v14 = vsel %vm899_vm2, %v1214_v21, %v1279_v63 }
 0x735   :  { %v1345_v4 = vsel %vm908_vm3, %v1337_v14, %v3244_v26 }
 0x737   :  { %v1314_v58 = vpop.permute.xlu0 %1313 }
 0x738   :  { %v1353_v11 = vsel %vm917_vm4, %v1345_v4, %v1314_v58  ;;  %v1396_v29 = vld [vmem:[#allocation2 + $0x38] sm:$0xff] }
 0x739   :  { %v1281_v56 = vpop.permute.xlu1 %1280  ;;  %1370 = vst.msk [vmem:[#allocation2 + $0x40] sm:$0xff] %vm1361_vm5, %v1353_v11  ;;  %1803 = vmatmul.mubr.msk.f32.gmra.mrb[16].mxu0 %vm1361_vm5, %v1396_v29 }
 0x73a   :  { %v1338_v38 = vsel %vm899_vm2, %v1215_v61, %v1281_v56  ;;  %1574 = vmatprep.mubr.f32.mxu0 %v2310_v13 }
 0x73b   :  { %v1346_v34 = vsel %vm908_vm3, %v1338_v38, %v3244_v26 }
 0x73d   :  { %v1316_v30 = vpop.permute.xlu0 %1315  ;;  %v1283_v20 = vpop.permute.xlu1 %1282 }
 0x73e   :  { %v1354_v59 = vsel %vm917_vm4, %v1346_v34, %v1316_v30  ;;  %v1339_v47 = vsel %vm899_vm2, %v1216_v45, %v1283_v20 }
 0x73f   :  { %1371 = vst.msk [vmem:[#allocation2 + $0x48] sm:$0xff] %vm1361_vm5, %v1354_v59  ;;  %v1347_v0 = vsel %vm908_vm3, %v1339_v47, %v3244_v26 }
 0x740   :  { %v1397_v27 = vld [vmem:[#allocation2 + $0x40] sm:$0xff] }
 0x741   :  { %v1318_v62 = vpop.permute.xlu0 %1317  ;;  %v1285_v31 = vpop.permute.xlu1 %1284  ;;  %1804 = vmatmul.mubr.msk.f32.gmra.mrb[18].mxu0 %vm1361_vm5, %v1397_v27 }
 0x742   :  { %v1355_v36 = vsel %vm917_vm4, %v1347_v0, %v1318_v62  ;;  %v1340_v24 = vsel %vm899_vm2, %v1217_v9, %v1285_v31  ;;  %1580 = vmatprep.mubr.f32.mxu0 %v2310_v13 }
 0x743   :  { %1372 = vst.msk [vmem:[#allocation2 + $0x50] sm:$0xff] %vm1361_vm5, %v1355_v36  ;;  %v1348_v42 = vsel %vm908_vm3, %v1340_v24, %v3244_v26 }
 0x745   :  { %v1320_v23 = vpop.permute.xlu0 %1319  ;;  %v1287_v50 = vpop.permute.xlu1 %1286 }
 0x746   :  { %v1356_v7 = vsel %vm917_vm4, %v1348_v42, %v1320_v23  ;;  %v1341_v35 = vsel %vm899_vm2, %v1218_v19, %v1287_v50  ;;  %v1398_v40 = vld [vmem:[#allocation2 + $0x48] sm:$0xff] }
 0x747   :  { %1373 = vst.msk [vmem:[#allocation2 + $0x58] sm:$0xff] %vm1361_vm5, %v1356_v7  ;;  %1805 = vmatmul.mubr.msk.f32.gmra.mrb[20].mxu0 %vm1361_vm5, %v1398_v40  ;;  %v1349_v48 = vsel %vm908_vm3, %v1341_v35, %v3244_v26 }
 0x748   :  { %1586 = vmatprep.mubr.f32.mxu0 %v2310_v13 }
 0x749   :  { %v1322_v57 = vpop.permute.xlu0 %1321  ;;  %v1289_v33 = vpop.permute.xlu1 %1288 }
 0x74a   :  { %v1357_v55 = vsel %vm917_vm4, %v1349_v48, %v1322_v57  ;;  %v1342_v32 = vsel %vm899_vm2, %v1219_v49, %v1289_v33  ;;  %v1399_v52 = vld [vmem:[#allocation2 + $0x50] sm:$0xff] }
 0x74b   :  { %1374 = vst.msk [vmem:[#allocation2 + $0x60] sm:$0xff] %vm1361_vm5, %v1357_v55  ;;  %1806 = vmatmul.mubr.msk.f32.gmra.mrb[22].mxu0 %vm1361_vm5, %v1399_v52  ;;  %v1350_v28 = vsel %vm908_vm3, %v1342_v32, %v3244_v26 }
 0x74c   :  { %1592 = vmatprep.mubr.f32.mxu0 %v2310_v13 }
 0x74d   :  { %v1324_v22 = vpop.permute.xlu0 %1323  ;;  %v1291_v1 = vpop.permute.xlu1 %1290 }
 0x74e   :  { %v1358_v10 = vsel %vm917_vm4, %v1350_v28, %v1324_v22  ;;  %v1343_v6 = vsel %vm899_vm2, %v1220_v54, %v1291_v1  ;;  %v1400_v2 = vld [vmem:[#allocation2 + $0x58] sm:$0xff] }
 0x74f   :  { %1375 = vst.msk [vmem:[#allocation2 + $0x68] sm:$0xff] %vm1361_vm5, %v1358_v10  ;;  %1807 = vmatmul.mubr.msk.f32.gmra.mrb[24].mxu0 %vm1361_vm5, %v1400_v2  ;;  %v1351_v39 = vsel %vm908_vm3, %v1343_v6, %v3244_v26 }
 0x750   :  { %1598 = vmatprep.mubr.f32.mxu0 %v2310_v13 }
 0x751   :  { %v1326_v5 = vpop.permute.xlu0 %1325  ;;  %v1293_v12 = vpop.permute.xlu1 %1292 }
 0x752   :  { %v1359_v51 = vsel %vm917_vm4, %v1351_v39, %v1326_v5  ;;  %v1344_v41 = vsel %vm899_vm2, %v1221_v43, %v1293_v12  ;;  %v1401_v16 = vld [vmem:[#allocation2 + $0x60] sm:$0xff] }
 0x753   :  { %1376 = vst.msk [vmem:[#allocation2 + $0x70] sm:$0xff] %vm1361_vm5, %v1359_v51  ;;  %1808 = vmatmul.mubr.msk.f32.gmra.mrb[26].mxu0 %vm1361_vm5, %v1401_v16  ;;  %v1352_v17 = vsel %vm908_vm3, %v1344_v41, %v3244_v26 }
 0x754   :  { %1604 = vmatprep.mubr.f32.mxu0 %v2310_v13 }
 0x755   :  { %v1328_v37 = vpop.permute.xlu0 %1327  ;;  %v1380_v18 = vpop.permute.xlu1 %1379 }
 0x756   :  { %v1360_v15 = vsel %vm917_vm4, %v1352_v17, %v1328_v37  ;;  %v1402_v46 = vld [vmem:[#allocation2 + $0x68] sm:$0xff] }
 0x757   :  { %1377 = vst.msk [vmem:[#allocation2 + $0x78] sm:$0xff] %vm1361_vm5, %v1360_v15  ;;  %1809 = vmatmul.mubr.msk.f32.gmra.mrb[28].mxu0 %vm1361_vm5, %v1402_v46 }
 0x758   :  { %1610 = vmatprep.mubr.f32.mxu0 %v2310_v13 }
 0x759   :  { %v1384_v25 = vpop.permute.xlu0 %1383 }
 0x75a   :  { %v1386_v8 = vsel %vm899_vm2, %v1380_v18, %v1384_v25  ;;  %v1403_v44 = vld [vmem:[#allocation2 + $0x70] sm:$0xff] }
 0x75b   :  { %1810 = vmatmul.mubr.msk.f32.gmra.mrb[30].mxu0 %vm1361_vm5, %v1403_v44  ;;  %v1387_v3 = vsel %vm908_vm3, %v1386_v8, 0.0 }
 0x75c   :  { %1616 = vmatprep.mubr.f32.mxu0 %v2310_v13  ;;  %1388 = vst [vmem:[#allocation19] sm:$0x3] %v1387_v3 }
 0x75e   :  { %v1404_v53 = vld [vmem:[#allocation2 + $0x78] sm:$0xff] }
 0x75f   :  { %1811 = vmatmul.mubr.msk.f32.gmra.mrb[32].mxu0 %vm1361_vm5, %v1404_v53 }
 0x7cc   :  { %v1528_v21 = vpop.f32.mrb[2].mxu0 }
 0x7cd   :  { %v1530_v63 = vpop.f32.mrb[3].mxu0  ;;  %v1623_v14 = vmul.f32 1.442695, %v1528_v21 }
 0x7ce   :  { %v1625_v26 = vmul.f32 1.442695, %v1530_v63 }
 0x7cf   :  { %2000 = vpow2.f32 %v1623_v14 }
 0x7d0   :  { %2002 = vpow2.f32 %v1625_v26 }
 0x7d2   :  { %v1534_v58 = vpop.f32.mrb[4].mxu0 }
 0x7d3   :  { %v1627_v4 = vmul.f32 1.442695, %v1534_v58  ;;  %v1536_v61 = vpop.f32.mrb[5].mxu0 }
 0x7d4   :  { %v1629_v11 = vmul.f32 1.442695, %v1536_v61 }
 0x7d5   :  { %2004 = vpow2.f32 %v1627_v4 }
 0x7d6   :  { %2006 = vpow2.f32 %v1629_v11 }
 0x7d8   :  { %v1540_v56 = vpop.f32.mrb[6].mxu0 }
 0x7d9   :  { %v1542_v13 = vpop.f32.mrb[7].mxu0  ;;  %v2001_v29 = vpop.eup %2000  ;;  %v1631_v59 = vmul.f32 1.442695, %v1540_v56 }
 0x7da   :  { %v2003_v38 = vpop.eup %2002  ;;  %v1633_v47 = vmul.f32 1.442695, %v1542_v13 }
 0x7db   :  { %2008 = vpow2.f32 %v1631_v59 }
 0x7dc   :  { %2010 = vpow2.f32 %v1633_v47 }
 0x7df   :  { %v2005_v45 = vpop.eup %2004 }
 0x7e0   :  { %v2007_v30 = vpop.eup %2006  ;;  %v1687_v34 = vpack.c.bf16 %v2005_v45, %v2001_v29 }
 0x7e1   :  { %v1688_v20 = vpack.c.bf16 %v2007_v30, %v2003_v38 }
 0x7e3   :  { %1704 = vmatprep.subr.bf16.mxu1 %v1688_v20 }
 0x7e4   :  { %1705 = vmatpush1.bf16.msra.mxu1 %v1687_v34 }
 0x7e5   :  { %v2009_v24 = vpop.eup %2008 }
 0x7e6   :  { %v2011_v19 = vpop.eup %2010 }
 0x7ec   :  { %v1546_v9 = vpop.f32.mrb[8].mxu0 }
 0x7ed   :  { %v1635_v62 = vmul.f32 1.442695, %v1546_v9  ;;  %v1548_v0 = vpop.f32.mrb[9].mxu0 }
 0x7ee   :  { %v1637_v31 = vmul.f32 1.442695, %v1548_v0 }
 0x7ef   :  { %2012 = vpow2.f32 %v1635_v62 }
 0x7f0   :  { %2014 = vpow2.f32 %v1637_v31 }
 0x7f4   :  { %v1552_v27 = vpop.f32.mrb[10].mxu0 }
 0x7f5   :  { %v1554_v36 = vpop.f32.mrb[11].mxu0  ;;  %v1639_v50 = vmul.f32 1.442695, %v1552_v27 }
 0x7f6   :  { %v1641_v35 = vmul.f32 1.442695, %v1554_v36 }
 0x7f7   :  { %2016 = vpow2.f32 %v1639_v50 }
 0x7f8   :  { %2018 = vpow2.f32 %v1641_v35 }
 0x7f9   :  { %v2013_v23 = vpop.eup %2012 }
 0x7fa   :  { %v2015_v42 = vpop.eup %2014  ;;  %v1689_v7 = vpack.c.bf16 %v2013_v23, %v2009_v24 }
 0x7fb   :  { %v1690_v40 = vpack.c.bf16 %v2015_v42, %v2011_v19 }
 0x7fc   :  { %v1558_v49 = vpop.f32.mrb[12].mxu0 }
 0x7fd   :  { %1706 = vmatprep.subr.bf16.mxu1 %v1690_v40  ;;  %v1643_v57 = vmul.f32 1.442695, %v1558_v49  ;;  %v1560_v48 = vpop.f32.mrb[13].mxu0 }
 0x7fe   :  { %1707 = vmatpush1.bf16.msra.mxu1 %v1689_v7  ;;  %v1645_v33 = vmul.f32 1.442695, %v1560_v48 }
 0x7ff   :  { %2020 = vpow2.f32 %v1643_v57 }
 0x800   :  { %2022 = vpow2.f32 %v1645_v33 }
 0x801   :  { %v2017_v52 = vpop.eup %2016 }
 0x802   :  { %v2019_v54 = vpop.eup %2018 }
 0x804   :  { %v1564_v55 = vpop.f32.mrb[14].mxu0 }
 0x805   :  { %v1566_v32 = vpop.f32.mrb[15].mxu0  ;;  %v1647_v28 = vmul.f32 1.442695, %v1564_v55 }
 0x806   :  { %v1649_v10 = vmul.f32 1.442695, %v1566_v32 }
 0x807   :  { %2024 = vpow2.f32 %v1647_v28 }
 0x808   :  { %2026 = vpow2.f32 %v1649_v10 }
 0x809   :  { %v2021_v22 = vpop.eup %2020 }
 0x80a   :  { %v2023_v1 = vpop.eup %2022  ;;  %v1691_v6 = vpack.c.bf16 %v2021_v22, %v2017_v52 }
 0x80b   :  { %v1692_v2 = vpack.c.bf16 %v2023_v1, %v2019_v54 }
 0x80c   :  { %v1570_v43 = vpop.f32.mrb[16].mxu0 }
 0x80d   :  { %v1651_v5 = vmul.f32 1.442695, %v1570_v43  ;;  %v1572_v39 = vpop.f32.mrb[17].mxu0  ;;  %1708 = vmatprep.subr.bf16.mxu1 %v1692_v2 }
 0x80e   :  { %v1653_v12 = vmul.f32 1.442695, %v1572_v39  ;;  %1709 = vmatpush1.bf16.msra.mxu1 %v1691_v6  ;;  %v1703_v39 = vld [vmem:[#allocation15] sm:$0x1] }
 0x80f   :  { %2028 = vpow2.f32 %v1651_v5 }
 0x810   :  { %2030 = vpow2.f32 %v1653_v12 }
 0x811   :  { %v2025_v37 = vpop.eup %2024 }
 0x812   :  { %v2027_v15 = vpop.eup %2026 }
 0x814   :  { %v1576_v51 = vpop.f32.mrb[18].mxu0 }
 0x815   :  { %v1578_v41 = vpop.f32.mrb[19].mxu0  ;;  %v1655_v16 = vmul.f32 1.442695, %v1576_v51 }
 0x816   :  { %v1657_v17 = vmul.f32 1.442695, %v1578_v41 }
 0x817   :  { %2032 = vpow2.f32 %v1655_v16 }
 0x818   :  { %2034 = vpow2.f32 %v1657_v17 }
 0x819   :  { %v2029_v46 = vpop.eup %2028 }
 0x81a   :  { %v1582_v18 = vpop.f32.mrb[20].mxu0  ;;  %v2031_v25 = vpop.eup %2030  ;;  %v1693_v3 = vpack.c.bf16 %v2029_v46, %v2025_v37 }
 0x81b   :  { %v1659_v8 = vmul.f32 1.442695, %v1582_v18  ;;  %v1584_v44 = vpop.f32.mrb[21].mxu0  ;;  %v1694_v60 = vpack.c.bf16 %v2031_v25, %v2027_v15 }
 0x81c   :  { %v1661_v53 = vmul.f32 1.442695, %v1584_v44 }
 0x81d   :  { %2036 = vpow2.f32 %v1659_v8  ;;  %1710 = vmatprep.subr.bf16.mxu1 %v1694_v60 }
 0x81e   :  { %2038 = vpow2.f32 %v1661_v53  ;;  %v1588_v21 = vpop.f32.mrb[22].mxu0  ;;  %1711 = vmatpush1.bf16.msra.mxu1 %v1693_v3 }
 0x81f   :  { %v1663_v63 = vmul.f32 1.442695, %v1588_v21  ;;  %v1590_v14 = vpop.f32.mrb[23].mxu0 }
 0x820   :  { %v1665_v26 = vmul.f32 1.442695, %v1590_v14 }
 0x821   :  { %2040 = vpow2.f32 %v1663_v63  ;;  %v2033_v56 = vpop.eup %2032 }
 0x822   :  { %v1594_v58 = vpop.f32.mrb[24].mxu0  ;;  %2042 = vpow2.f32 %v1665_v26  ;;  %v2035_v13 = vpop.eup %2034 }
 0x823   :  { %v1667_v4 = vmul.f32 1.442695, %v1594_v58  ;;  %v1596_v61 = vpop.f32.mrb[25].mxu0 }
 0x824   :  { %v1669_v11 = vmul.f32 1.442695, %v1596_v61 }
 0x825   :  { %2044 = vpow2.f32 %v1667_v4 }
 0x826   :  { %2046 = vpow2.f32 %v1669_v11  ;;  %v1600_v29 = vpop.f32.mrb[26].mxu0 }
 0x827   :  { %v2037_v38 = vpop.eup %2036  ;;  %v1671_v45 = vmul.f32 1.442695, %v1600_v29  ;;  %v1602_v30 = vpop.f32.mrb[27].mxu0 }
 0x828   :  { %v2039_v34 = vpop.eup %2038  ;;  %v1673_v20 = vmul.f32 1.442695, %v1602_v30  ;;  %v1695_v59 = vpack.c.bf16 %v2037_v38, %v2033_v56 }
 0x829   :  { %v1696_v47 = vpack.c.bf16 %v2039_v34, %v2035_v13  ;;  %2048 = vpow2.f32 %v1671_v45 }
 0x82a   :  { %v1606_v9 = vpop.f32.mrb[28].mxu0  ;;  %2050 = vpow2.f32 %v1673_v20 }
 0x82b   :  { %v1675_v62 = vmul.f32 1.442695, %v1606_v9  ;;  %v1608_v0 = vpop.f32.mrb[29].mxu0  ;;  %1712 = vmatprep.subr.bf16.mxu1 %v1696_v47  ;;  %v2041_v27 = vpop.eup %2040 }
 0x82c   :  { %v1677_v31 = vmul.f32 1.442695, %v1608_v0  ;;  %1713 = vmatpush1.bf16.msra.mxu1 %v1695_v59  ;;  %v2043_v36 = vpop.eup %2042 }
 0x82d   :  { %2052 = vpow2.f32 %v1675_v62 }
 0x82e   :  { %2054 = vpow2.f32 %v1677_v31  ;;  %v1612_v24 = vpop.f32.mrb[30].mxu0 }
 0x82f   :  { %v2045_v19 = vpop.eup %2044  ;;  %v1679_v23 = vmul.f32 1.442695, %v1612_v24  ;;  %v1614_v42 = vpop.f32.mrb[31].mxu0 }
 0x830   :  { %v2047_v50 = vpop.eup %2046  ;;  %v1681_v7 = vmul.f32 1.442695, %v1614_v42  ;;  %v1697_v35 = vpack.c.bf16 %v2045_v19, %v2041_v27 }
 0x831   :  { %v1698_v40 = vpack.c.bf16 %v2047_v50, %v2043_v36  ;;  %2056 = vpow2.f32 %v1679_v23 }
 0x832   :  { %v1618_v49 = vpop.f32.mrb[32].mxu0  ;;  %2058 = vpow2.f32 %v1681_v7 }
 0x833   :  { %v1683_v57 = vmul.f32 1.442695, %v1618_v49  ;;  %v1620_v48 = vpop.f32.mrb[33].mxu0  ;;  %1714 = vmatprep.subr.bf16.mxu1 %v1698_v40  ;;  %v2049_v55 = vpop.eup %2048 }
 0x834   :  { %v1685_v33 = vmul.f32 1.442695, %v1620_v48  ;;  %1715 = vmatpush1.bf16.msra.mxu1 %v1697_v35  ;;  %v2051_v32 = vpop.eup %2050 }
 0x835   :  { %2060 = vpow2.f32 %v1683_v57 }
 0x836   :  { %2062 = vpow2.f32 %v1685_v33 }
 0x837   :  { %v2053_v52 = vpop.eup %2052 }
 0x838   :  { %v2055_v54 = vpop.eup %2054  ;;  %v1699_v22 = vpack.c.bf16 %v2053_v52, %v2049_v55 }
 0x839   :  { %v1700_v28 = vpack.c.bf16 %v2055_v54, %v2051_v32 }
 0x83b   :  { %1716 = vmatprep.subr.bf16.mxu1 %v1700_v28  ;;  %v2057_v1 = vpop.eup %2056 }
 0x83c   :  { %1717 = vmatpush1.bf16.msra.mxu1 %v1699_v22  ;;  %v2059_v10 = vpop.eup %2058 }
 0x83f   :  { %v2061_v6 = vpop.eup %2060 }
 0x840   :  { %v2063_v2 = vpop.eup %2062  ;;  %v1701_v43 = vpack.c.bf16 %v2061_v6, %v2057_v1 }
 0x841   :  { %v1702_v5 = vpack.c.bf16 %v2063_v2, %v2059_v10 }
 0x843   :  { %1718 = vmatprep.subr.bf16.mxu1 %v1702_v5 }
 0x844   :  { %1719 = vmatpush1.bf16.msra.mxu1 %v1701_v43 }
 0x847   :  { %1737 = vmatmul.mubr.bf16.vlgmr.msra.gmra.mrb[4].mxu1 %v1703_v39 }
 0x848   :  { %2251 = shalt.err (!%p2248_p12)
}
 0x849   :  { %s2252_s0 = scalar_lea.hbm %s3352_s10, 32 }
 0x84a   :  { %p2253_p13 = scmp.ne.s32.totalorder %s3352_s10, %s2252_s0  ;;  %p2256_p0 = scmp.lt.u32.totalorder %s2252_s0, %s3352_s10 }
 0x84c   :  { %p2258_p1 = pnand %p2256_p0, %p2253_p13 }
 0x84e   :  { %2261 = shalt.err (!%p2258_p1)
}
 0x84f   :  { %1776 = dma.vmem_to_hbm [thread:$0]  %s1774_s28, 32, %s3352_s10, [#allocation20]  }
 0x850   :  { %s2324_s1 = smov [#allocation18]  }
 0x851   :  { %s1763_s16 = sshll.u32 %s2324_s1, 4  ;;  %s1764_s16 = int_to_ptr.vmem [resolvable:$true] %s1763_s16 }
 0x852   :  { %s2262_s20 = scalar_lea.vmem %s1764_s16, 64  ;;  %p2267_p3 = scmp.lt.s32.totalorder %s1764_s16, %s1764_s16 }
 0x853   :  { %p2263_p2 = scmp.ne.s32.totalorder %s1764_s16, %s2262_s20  ;;  %p2268_p4 = scmp.lt.s32.totalorder %s2262_s20, %s2262_s20 }
 0x855   :  { %p2269_p5 = por %p2268_p4, %p2267_p3 }
 0x857   :  { %p2270_p6 = pnand %p2269_p5, %p2263_p2 }
 0x91a   :  { %v1738_v12 = vpop.f32.mrb[4].mxu1 }
 0x91b   :  { %v1740_v51 = vpop.f32.mrb[5].mxu1 }
 0x91c   :  { %v1747_v41 = vcombine.low %v1738_v12, %v1740_v51  ;;  %v1742_v16 = vpop.f32.mrb[6].mxu1 }
 0x91d   :  { %v1743_v37 = vpop.f32.mrb[7].mxu1 }
 0x91e   :  { %1812 = vst.sshfl [vmem:[#allocation18] sm:$0x33 pattern:$0x76325410] %v1747_v41 }
 0x91f   :  { %2273 = shalt.err (!%p2270_p6)
}
 0x920   :  { %s2274_s10 = scalar_lea.hbm %s3351_s9, 64 }
 0x921   :  { %p2275_p7 = scmp.ne.s32.totalorder %s3351_s9, %s2274_s10  ;;  %p2278_p8 = scmp.lt.u32.totalorder %s2274_s10, %s3351_s9 }
 0x923   :  { %p2280_p9 = pnand %p2278_p8, %p2275_p7 }
 0x925   :  { %2283 = shalt.err (!%p2280_p9)
}
 0x926   :  { %1766 = dma.vmem_to_hbm [thread:$0]  %s1764_s16, 64, %s3351_s9, [#allocation6]  }
 0x927   :  { %2294 = dma.done.wait [#allocation6], 64  }
 0x928   :  { %2295 = vsyncadd [#allocation6], 4294967232 }
 0x929   :  { %2296 = dma.done.wait [#allocation20], 32  }
 0x92a   :  { %2297 = vsyncadd [#allocation20], 4294967264 }
 0x92b   :  { %1783 = vsyncpa [#allocation5], 1 }
 0x92c   :  { %1784 = vsyncpa [#allocation8], 1 }
 0x92d   :  { %1785 = vsyncpa [#allocation11], 1 }
 0x92e   :  { %1786 = vsyncpa [#allocation14], 1 }
 0x92f   :  { %1787 = vsyncpa [#allocation17], 1 }
 0x930   :  { %1788 = vsyncpa [#allocation6], 1 }
 0x931   :  { %1789 = vsyncpa [#allocation20], 1 }

</bundles_post_ra>
